<compile_context>
chip_gen: v7x
topology: tpu7x:2x2x1
jax: 0.10.0
libtpu: 0.0.40
codegen_flags: <defaults>
</compile_context>

<pallas_src>
import functools
import math

import jax
import jax.numpy as jnp
from jax.experimental import pallas as pl
from jax.experimental.pallas import tpu as pltpu


# ---------------------------------------------------------------------------
# In-kernel math helpers (f32 element-wise math, bf16 MXU operands)
# ---------------------------------------------------------------------------

def _layernorm(x, g, b, eps=1e-5):
    mean = jnp.mean(x, axis=-1, keepdims=True)
    var = jnp.mean((x - mean) ** 2, axis=-1, keepdims=True)
    return (x - mean) * jax.lax.rsqrt(var + eps) * g + b


# ---------------------------------------------------------------------------
# Fused residual-layer kernel:
#   LN1 -> fused QKV matmul -> per-head causal softmax attention (accumulated
#   through w_o) -> +residual -> LN2 -> w_fc -> QuickGELU -> w_proj -> +residual
# Grid = (batch_tiles, layers); residual stream persists in acc_ref (VMEM).
# ---------------------------------------------------------------------------

def _layer_kernel(x_ref, pos_ref,
                  g1_ref, b1_ref, wqkv_ref, bqkv_ref, wo_ref, bo_ref,
                  g2_ref, b2_ref, wfc_ref, bfc_ref, wpr_ref, bpr_ref,
                  o_ref, acc_ref, *, num_heads, scale):
    layer = pl.program_id(1)
    TB, S, D = acc_ref.shape
    hd = D // num_heads
    R = TB * S

    # Layer 0: fuse the positional-embedding add; afterwards the residual
    # stream stays VMEM-resident in acc_ref for the whole layer sweep.
    @pl.when(layer == 0)
    def _():
        acc_ref[...] = (x_ref[...].astype(jnp.float32)
                        + pos_ref[...].astype(jnp.float32))

    x = acc_ref[...].reshape(R, D)                          # (R, D) f32 residual

    # ---------------- attention branch ----------------
    h = _layernorm(x, g1_ref[0], b1_ref[0])
    qkv = jnp.dot(h.astype(jnp.bfloat16), wqkv_ref[0],      # fused (D, 3D) matmul
                  preferred_element_type=jnp.float32) + bqkv_ref[0]
    q = qkv[:, 0 * D:1 * D].reshape(TB, S, D).astype(jnp.bfloat16)
    k = qkv[:, 1 * D:2 * D].reshape(TB, S, D).astype(jnp.bfloat16)
    v = qkv[:, 2 * D:3 * D].reshape(TB, S, D).astype(jnp.bfloat16)

    row = jax.lax.broadcasted_iota(jnp.int32, (S, S), 0)
    col = jax.lax.broadcasted_iota(jnp.int32, (S, S), 1)
    causal = col <= row                                     # CLIP causal text mask

    wo = wo_ref[0]                                          # (D, D) bf16
    attn = jnp.zeros((R, D), jnp.float32)
    for hh in range(num_heads):                             # static unroll over heads
        sl = slice(hh * hd, (hh + 1) * hd)
        s = jnp.einsum("bqd,bkd->bqk", q[:, :, sl], k[:, :, sl],
                       preferred_element_type=jnp.float32) * scale
        s = jnp.where(causal, s, -1e30)                     # finite mask: NaN-safe
        s = s - jnp.max(s, axis=-1, keepdims=True)
        p = jnp.exp(s)
        p = p / jnp.sum(p, axis=-1, keepdims=True)          # exact reciprocal
        o_h = jnp.einsum("bqk,bkd->bqd", p.astype(jnp.bfloat16), v[:, :, sl],
                         preferred_element_type=jnp.float32)
        # Accumulate straight through this head's slice of w_o: keeps every MXU
        # output lane-dense (R, D) and removes the head-concat relayout.
        attn = attn + jnp.dot(o_h.reshape(R, hd).astype(jnp.bfloat16),
                              wo[sl, :], preferred_element_type=jnp.float32)
    x = x + attn + bo_ref[0]

    # ---------------- MLP branch ----------------
    h = _layernorm(x, g2_ref[0], b2_ref[0])
    h = jnp.dot(h.astype(jnp.bfloat16), wfc_ref[0],
                preferred_element_type=jnp.float32) + bfc_ref[0]
    h = h * jax.nn.sigmoid(1.702 * h)                       # QuickGELU fused epilogue
    h = jnp.dot(h.astype(jnp.bfloat16), wpr_ref[0],
                preferred_element_type=jnp.float32) + bpr_ref[0]
    x = x + h

    xt = x.reshape(TB, S, D)
    acc_ref[...] = xt
    o_ref[...] = xt.astype(o_ref.dtype)                     # flushed after last layer


def _final_head_kernel(x_ref, g_ref, b_ref, wp_ref, o_ref):
    # x_ref: (B, D) gathered EOT rows.  Fused final LN + text projection.
    # Kept in f32: negligible compute, keeps the output embedding exact.
    x = x_ref[...].astype(jnp.float32)
    h = _layernorm(x, g_ref[...], b_ref[...])
    o_ref[...] = jnp.dot(h, wp_ref[...],
                         preferred_element_type=jnp.float32).astype(o_ref.dtype)


# ---------------------------------------------------------------------------
# pallas_call wrappers
# ---------------------------------------------------------------------------

def _choose_batch_tile(B, S):
    """Batch elements per grid step: aim for TB*S >= 256 MXU rows, but keep
    >= 2 steps on the parallel axis when possible (v7x megacore)."""
    divisors = [d for d in range(1, B + 1) if B % d == 0]
    cands = [d for d in divisors if d * S <= 1024] or [1]
    for d in cands:
        if d * S >= 256 and B // d >= 2:
            return d
    for d in reversed(cands):
        if d * S >= 256:
            return d
    return cands[-1]


def _vmem_limit_bytes(tb, S, D):
    """Explicit scoped-VMEM budget from the actual tile sizes (+ headroom)."""
    w = 2 * (D * 3 * D + D * D + D * 4 * D + 4 * D * D)       # bf16 weights / layer
    vecs = 4 * (13 * D)                                        # f32 LN params + biases
    io = 4 * tb * S * D * 2 + 4 * S * D                        # x block + out block + pos
    scratch = 4 * tb * S * D                                   # residual accumulator
    work = 4 * tb * S * (3 * D + 4 * D) + 4 * tb * S * S * 2   # qkv / mlp / score tiles
    est = int(1.25 * (2 * (w + vecs + io) + scratch + work))   # 2x = double buffering
    return int(min(96 * (1 << 20), max(est, 32 * (1 << 20))))


def transformer_layers(x, pos, stacked, *, num_heads, num_layers, tb):
    B, S, D = x.shape
    scale = 1.0 / math.sqrt(D // num_heads)

    x_spec = pl.BlockSpec((tb, S, D), lambda b, l: (b, 0, 0))
    pos_spec = pl.BlockSpec((S, D), lambda b, l: (0, 0))

    names = ["ln1_g", "ln1_b", "w_qkv", "b_qkv", "w_o", "b_o",
             "ln2_g", "ln2_b", "w_fc", "b_fc", "w_proj", "b_proj"]
    w_args = [stacked[n] for n in names]
    w_specs = [pl.BlockSpec((1,) + w.shape[1:], lambda b, l: (l, 0, 0))
               for w in w_args]

    kern = functools.partial(_layer_kernel, num_heads=num_heads, scale=scale)

    return pl.pallas_call(
        kern,
        out_shape=jax.ShapeDtypeStruct((B, S, D), x.dtype),
        grid=(B // tb, num_layers),
        in_specs=[x_spec, pos_spec] + w_specs,
        out_specs=x_spec,
        scratch_shapes=[pltpu.VMEM((tb, S, D), jnp.float32)],
        compiler_params=pltpu.CompilerParams(
            dimension_semantics=("parallel", "arbitrary"),
            vmem_limit_bytes=_vmem_limit_bytes(tb, S, D)),
    )(x, pos, *w_args)


def final_head(sel, gamma, beta, proj):
    B, D = sel.shape
    E = proj.shape[1]
    return pl.pallas_call(
        _final_head_kernel,
        out_shape=jax.ShapeDtypeStruct((B, E), sel.dtype),
        grid=(1,),
        in_specs=[pl.BlockSpec((B, D), lambda i: (0, 0)),
                  pl.BlockSpec((1, D), lambda i: (0, 0)),
                  pl.BlockSpec((1, D), lambda i: (0, 0)),
                  pl.BlockSpec((D, E), lambda i: (0, 0))],
        out_specs=pl.BlockSpec((B, E), lambda i: (0, 0)),
    )(sel, gamma.reshape(1, D), beta.reshape(1, D), proj)


# ---------------------------------------------------------------------------
# Parameter stacking: one leading layer axis so the layer grid dimension can
# index weights (bf16 matmul weights, f32 LN params / biases).
# ---------------------------------------------------------------------------

def _stack_blocks(blocks):
    def mat(name):
        return jnp.stack([blk[name] for blk in blocks], 0).astype(jnp.bfloat16)

    def vec(name):
        return jnp.stack([blk[name] for blk in blocks], 0)[:, None, :]

    return {
        "ln1_g": vec("ln1_g"), "ln1_b": vec("ln1_b"),
        "w_qkv": mat("w_qkv"), "b_qkv": vec("b_qkv"),
        "w_o": mat("w_o"), "b_o": vec("b_o"),
        "ln2_g": vec("ln2_g"), "ln2_b": vec("ln2_b"),
        "w_fc": mat("w_fc"), "b_fc": vec("b_fc"),
        "w_proj": mat("w_proj"), "b_proj": vec("b_proj"),
    }


# ---------------------------------------------------------------------------
# Full TextEncoder forward
# ---------------------------------------------------------------------------

def text_encoder_forward(prompts, tokenized_prompts, params):
    num_heads = params["num_heads"]
    B, S, D = prompts.shape
    num_layers = len(params["blocks"])

    # bf16-sublane-align the sequence dim (16); padded rows are inert under
    # the causal mask and never read back.
    s_pad = ((S + 15) // 16) * 16
    x, pos = prompts, params["pos_emb"]
    if s_pad != S:
        x = jnp.pad(x, ((0, 0), (0, s_pad - S), (0, 0)))
        pos = jnp.pad(pos, ((0, s_pad - S), (0, 0)))

    stacked = _stack_blocks(params["blocks"])
    tb = _choose_batch_tile(B, s_pad)
    x = transformer_layers(x, pos, stacked, num_heads=num_heads,
                           num_layers=num_layers, tb=tb)

    # EOT gather (CLIP convention: EOT token has the maximal id): only B rows
    # leave the transformer output; final LN + text projection are fused into
    # one tiny kernel over those rows.
    eot = jnp.argmax(tokenized_prompts, axis=-1)
    sel = x[jnp.arange(B), eot]                                   # (B, D) glue
    return final_head(sel, params["lnf_g"], params["lnf_b"],
                      params["text_projection"])                  # (B, E)


# ---------------------------------------------------------------------------
# Deterministic synthetic parameters (shapes implied by CLIP text transformer)
# ---------------------------------------------------------------------------

def init_params(key, *, depth, width, heads, embed_dim, ctx_len):
    keys = jax.random.split(key, 2 + depth)
    params = {
        "num_heads": heads,
        "pos_emb": 0.01 * jax.random.normal(keys[0], (ctx_len, width), jnp.float32),
        "lnf_g": jnp.ones((width,), jnp.float32),
        "lnf_b": jnp.zeros((width,), jnp.float32),
        "text_projection": 0.02 * jax.random.normal(keys[1], (width, embed_dim), jnp.float32),
        "blocks": [],
    }
    for i in range(depth):
        bk = jax.random.split(keys[2 + i], 4)
        params["blocks"].append(dict(
            ln1_g=jnp.ones((width,), jnp.float32),
            ln1_b=jnp.zeros((width,), jnp.float32),
            w_qkv=0.02 * jax.random.normal(bk[0], (width, 3 * width), jnp.float32),
            b_qkv=jnp.zeros((3 * width,), jnp.float32),
            w_o=0.02 * jax.random.normal(bk[1], (width, width), jnp.float32),
            b_o=jnp.zeros((width,), jnp.float32),
            ln2_g=jnp.ones((width,), jnp.float32),
            ln2_b=jnp.zeros((width,), jnp.float32),
            w_fc=0.02 * jax.random.normal(bk[2], (width, 4 * width), jnp.float32),
            b_fc=jnp.zeros((4 * width,), jnp.float32),
            w_proj=0.02 * jax.random.normal(bk[3], (4 * width, width), jnp.float32),
            b_proj=jnp.zeros((width,), jnp.float32),
        ))
    return params


# ---------------------------------------------------------------------------
# Pure-JAX f32 reference (silent correctness check)
# ---------------------------------------------------------------------------

def _ref_ln(x, g, b):
    m = jnp.mean(x, -1, keepdims=True)
    v = jnp.mean((x - m) ** 2, -1, keepdims=True)
    return (x - m) * jax.lax.rsqrt(v + 1e-5) * g + b


def reference_forward(prompts, tokenized_prompts, params):
    H = params["num_heads"]
    x = prompts + params["pos_emb"]
    B, S, D = x.shape
    hd = D // H
    for p in params["blocks"]:
        h = _ref_ln(x, p["ln1_g"], p["ln1_b"])
        qkv = h @ p["w_qkv"] + p["b_qkv"]
        q, k, v = jnp.split(qkv, 3, axis=-1)
        q = q.reshape(B, S, H, hd).transpose(0, 2, 1, 3)
        k = k.reshape(B, S, H, hd).transpose(0, 2, 1, 3)
        v = v.reshape(B, S, H, hd).transpose(0, 2, 1, 3)
        s = jnp.einsum("bhqd,bhkd->bhqk", q, k) / math.sqrt(hd)
        mask = jnp.tril(jnp.ones((S, S), bool))
        s = jnp.where(mask, s, -jnp.inf)
        a = jax.nn.softmax(s, axis=-1)
        o = jnp.einsum("bhqk,bhkd->bhqd", a, v).transpose(0, 2, 1, 3).reshape(B, S, D)
        x = x + (o @ p["w_o"] + p["b_o"])
        h = _ref_ln(x, p["ln2_g"], p["ln2_b"])
        h = h @ p["w_fc"] + p["b_fc"]
        h = h * jax.nn.sigmoid(1.702 * h)
        x = x + (h @ p["w_proj"] + p["b_proj"])
    x = _ref_ln(x, params["lnf_g"], params["lnf_b"])
    eot = jnp.argmax(tokenized_prompts, axis=-1)
    sel = x[jnp.arange(B), eot]
    return sel @ params["text_projection"]


# ---------------------------------------------------------------------------
if __name__ == "__main__":
    B, S, D, HEADS, DEPTH, EMBED = 2, 8, 32, 4, 2, 16

    key = jax.random.PRNGKey(0)
    k_prompt, k_tok, k_param = jax.random.split(key, 3)

    prompts = jax.random.normal(k_prompt, (B, S, D), jnp.float32)      # (batch, seq, width)
    tokenized_prompts = jax.random.randint(k_tok, (B, S), 0, 1000, jnp.int32)
    params = init_params(k_param, depth=DEPTH, width=D, heads=HEADS,
                         embed_dim=EMBED, ctx_len=S)

    out = text_encoder_forward(prompts, tokenized_prompts, params)
    out = jax.block_until_ready(out)

    ref = reference_forward(prompts, tokenized_prompts, params)
    assert out.shape == (B, EMBED)
    # Tolerance covers bf16 matmul operands (f32 accumulation) vs the f32 reference.
    assert jnp.allclose(out, ref, atol=2e-2, rtol=2e-2), "mismatch vs reference"

    print("KERNEL_OK")
</pallas_src>

<mosaic_0001>
module attributes {stable_mosaic.version = 11 : i64} {
  func.func @_layer_kernel(%arg0: i32, %arg1: i32, %arg2: memref<2x16x32xf32, #tpu.memory_space<vmem>>, %arg3: memref<16x32xf32, #tpu.memory_space<vmem>>, %arg4: memref<1x1x32xf32, #tpu.memory_space<vmem>>, %arg5: memref<1x1x32xf32, #tpu.memory_space<vmem>>, %arg6: memref<1x32x96xbf16, #tpu.memory_space<vmem>>, %arg7: memref<1x1x96xf32, #tpu.memory_space<vmem>>, %arg8: memref<1x32x32xbf16, #tpu.memory_space<vmem>>, %arg9: memref<1x1x32xf32, #tpu.memory_space<vmem>>, %arg10: memref<1x1x32xf32, #tpu.memory_space<vmem>>, %arg11: memref<1x1x32xf32, #tpu.memory_space<vmem>>, %arg12: memref<1x32x128xbf16, #tpu.memory_space<vmem>>, %arg13: memref<1x1x128xf32, #tpu.memory_space<vmem>>, %arg14: memref<1x128x32xbf16, #tpu.memory_space<vmem>>, %arg15: memref<1x1x32xf32, #tpu.memory_space<vmem>>, %arg16: memref<2x16x32xf32, #tpu.memory_space<vmem>>, %arg17: memref<2x16x32xf32, #tpu.memory_space<vmem>>) attributes {dimension_semantics = [#tpu.dimension_semantics<parallel>, #tpu.dimension_semantics<arbitrary>], iteration_bounds = array<i64: 1, 2>, scalar_prefetch = 0 : i64, scratch_operands = 1 : i64, tpu.core_type = #tpu.core_type<tc>, window_params = [{transform_indices = @transform_0, window_bounds = array<i64: 2, 16, 32>}, {pipeline_mode = #tpu.pipeline_mode<synchronous>, transform_indices = @transform_1, window_bounds = array<i64: 16, 32>}, {transform_indices = @transform_2, window_bounds = array<i64: 1, 1, 32>}, {transform_indices = @transform_3, window_bounds = array<i64: 1, 1, 32>}, {transform_indices = @transform_4, window_bounds = array<i64: 1, 32, 96>}, {transform_indices = @transform_5, window_bounds = array<i64: 1, 1, 96>}, {transform_indices = @transform_6, window_bounds = array<i64: 1, 32, 32>}, {transform_indices = @transform_7, window_bounds = array<i64: 1, 1, 32>}, {transform_indices = @transform_8, window_bounds = array<i64: 1, 1, 32>}, {transform_indices = @transform_9, window_bounds = array<i64: 1, 1, 32>}, {transform_indices = @transform_10, window_bounds = array<i64: 1, 32, 128>}, {transform_indices = @transform_11, window_bounds = array<i64: 1, 1, 128>}, {transform_indices = @transform_12, window_bounds = array<i64: 1, 128, 32>}, {transform_indices = @transform_13, window_bounds = array<i64: 1, 1, 32>}, {transform_indices = @transform_14, window_bounds = array<i64: 2, 16, 32>}]} {
    %c0_i32 = arith.constant 0 : i32
    %0 = arith.cmpi eq, %arg1, %c0_i32 : i32
    %1 = arith.extui %0 : i1 to i32
    %c0_i32_0 = arith.constant 0 : i32
    %2 = arith.cmpi ne, %1, %c0_i32_0 : i32
    scf.if %2 {
      %c0_88 = arith.constant 0 : index
      %c0_89 = arith.constant 0 : index
      %c0_90 = arith.constant 0 : index
      %217 = vector.load %arg2[%c0_88, %c0_89, %c0_90] : memref<2x16x32xf32, #tpu.memory_space<vmem>>, vector<2x16x32xf32>
      %c0_91 = arith.constant 0 : index
      %c0_92 = arith.constant 0 : index
      %218 = vector.load %arg3[%c0_91, %c0_92] : memref<16x32xf32, #tpu.memory_space<vmem>>, vector<16x32xf32>
      %219 = vector.shape_cast %218 : vector<16x32xf32> to vector<1x16x32xf32>
      %220 = vector.broadcast %219 : vector<1x16x32xf32> to vector<2x16x32xf32>
      %221 = arith.addf %217, %220 : vector<2x16x32xf32>
      %c0_93 = arith.constant 0 : index
      %c0_94 = arith.constant 0 : index
      %c0_95 = arith.constant 0 : index
      %222 = vector.load %arg17[%c0_93, %c0_94, %c0_95] : memref<2x16x32xf32, #tpu.memory_space<vmem>>, vector<2x16x32xf32>
      tpu.vector_store %arg17[%c0_93, %c0_94, %c0_95], %221 {strides = array<i32>} : memref<2x16x32xf32, #tpu.memory_space<vmem>>, vector<2x16x32xf32>,
    } else {
    }
    %c0 = arith.constant 0 : index
    %c0_1 = arith.constant 0 : index
    %c0_2 = arith.constant 0 : index
    %3 = vector.load %arg17[%c0, %c0_1, %c0_2] : memref<2x16x32xf32, #tpu.memory_space<vmem>>, vector<2x16x32xf32>
    %4 = vector.shape_cast %3 : vector<2x16x32xf32> to vector<32x32xf32>
    %c0_3 = arith.constant 0 : index
    %c0_4 = arith.constant 0 : index
    %c0_5 = arith.constant 0 : index
    %5 = vector.load %arg4[%c0_3, %c0_4, %c0_5] : memref<1x1x32xf32, #tpu.memory_space<vmem>>, vector<1x1x32xf32>
    %6 = vector.shape_cast %5 : vector<1x1x32xf32> to vector<1x32xf32>
    %c0_6 = arith.constant 0 : index
    %c0_7 = arith.constant 0 : index
    %c0_8 = arith.constant 0 : index
    %7 = vector.load %arg5[%c0_6, %c0_7, %c0_8] : memref<1x1x32xf32, #tpu.memory_space<vmem>>, vector<1x1x32xf32>
    %8 = vector.shape_cast %7 : vector<1x1x32xf32> to vector<1x32xf32>
    %cst = arith.constant dense<0.000000e+00> : vector<32xf32>
    %9 = vector.multi_reduction <add>, %4, %cst [1] : vector<32x32xf32> to vector<32xf32>
    %10 = vector.shape_cast %9 : vector<32xf32> to vector<32x1xf32>
    %cst_9 = arith.constant 3.200000e+01 : f32
    %11 = vector.broadcast %cst_9 : f32 to vector<32x1xf32>
    %12 = arith.divf %10, %11 : vector<32x1xf32>
    %13 = vector.broadcast %12 : vector<32x1xf32> to vector<32x32xf32>
    %14 = arith.subf %4, %13 : vector<32x32xf32>
    %15 = arith.mulf %14, %14 : vector<32x32xf32>
    %cst_10 = arith.constant dense<0.000000e+00> : vector<32xf32>
    %16 = vector.multi_reduction <add>, %15, %cst_10 [1] : vector<32x32xf32> to vector<32xf32>
    %17 = vector.shape_cast %16 : vector<32xf32> to vector<32x1xf32>
    %cst_11 = arith.constant 3.200000e+01 : f32
    %18 = vector.broadcast %cst_11 : f32 to vector<32x1xf32>
    %19 = arith.divf %17, %18 : vector<32x1xf32>
    %20 = vector.broadcast %12 : vector<32x1xf32> to vector<32x32xf32>
    %21 = arith.subf %4, %20 : vector<32x32xf32>
    %cst_12 = arith.constant 9.99999974E-6 : f32
    %22 = vector.broadcast %cst_12 : f32 to vector<32x1xf32>
    %23 = arith.addf %19, %22 : vector<32x1xf32>
    %24 = math.rsqrt %23 : vector<32x1xf32>
    %25 = vector.broadcast %24 : vector<32x1xf32> to vector<32x32xf32>
    %26 = arith.mulf %21, %25 : vector<32x32xf32>
    %27 = vector.broadcast %6 : vector<1x32xf32> to vector<32x32xf32>
    %28 = arith.mulf %26, %27 : vector<32x32xf32>
    %29 = vector.broadcast %8 : vector<1x32xf32> to vector<32x32xf32>
    %30 = arith.addf %28, %29 : vector<32x32xf32>
    %31 = arith.truncf %30 : vector<32x32xf32> to vector<32x32xbf16>
    %c0_13 = arith.constant 0 : index
    %c0_14 = arith.constant 0 : index
    %c0_15 = arith.constant 0 : index
    %32 = vector.load %arg6[%c0_13, %c0_14, %c0_15] : memref<1x32x96xbf16, #tpu.memory_space<vmem>>, vector<1x32x96xbf16>
    %33 = vector.shape_cast %32 : vector<1x32x96xbf16> to vector<32x96xbf16>
    %cst_16 = arith.constant dense<0.000000e+00> : vector<32x96xf32>
    %34 = tpu.matmul %31, %33, %cst_16 {dimension_numbers = #tpu.dot_dimension_numbers<[1], [0], [0], [1], [0, 0, 1, 1], [], []>} : vector<32x32xbf16>, vector<32x96xbf16>, vector<32x96xf32> -> vector<32x96xf32>
    %c0_17 = arith.constant 0 : index
    %c0_18 = arith.constant 0 : index
    %c0_19 = arith.constant 0 : index
    %35 = vector.load %arg7[%c0_17, %c0_18, %c0_19] : memref<1x1x96xf32, #tpu.memory_space<vmem>>, vector<1x1x96xf32>
    %36 = vector.shape_cast %35 : vector<1x1x96xf32> to vector<1x96xf32>
    %37 = vector.broadcast %36 : vector<1x96xf32> to vector<32x96xf32>
    %38 = arith.addf %34, %37 : vector<32x96xf32>
    %39 = vector.extract_strided_slice %38 {offsets = [0, 0], sizes = [32, 32], strides = [1, 1]} : vector<32x96xf32> to vector<32x32xf32>
    %40 = vector.shape_cast %39 : vector<32x32xf32> to vector<2x16x32xf32>
    %41 = arith.truncf %40 : vector<2x16x32xf32> to vector<2x16x32xbf16>
    %42 = vector.extract_strided_slice %38 {offsets = [0, 32], sizes = [32, 32], strides = [1, 1]} : vector<32x96xf32> to vector<32x32xf32>
    %43 = vector.shape_cast %42 : vector<32x32xf32> to vector<2x16x32xf32>
    %44 = arith.truncf %43 : vector<2x16x32xf32> to vector<2x16x32xbf16>
    %45 = vector.extract_strided_slice %38 {offsets = [0, 64], sizes = [32, 32], strides = [1, 1]} : vector<32x96xf32> to vector<32x32xf32>
    %46 = vector.shape_cast %45 : vector<32x32xf32> to vector<2x16x32xf32>
    %47 = arith.truncf %46 : vector<2x16x32xf32> to vector<2x16x32xbf16>
    %48 = tpu.iota {dimensions = array<i32: 0>} : vector<16x16xi32>
    %49 = tpu.iota {dimensions = array<i32: 1>} : vector<16x16xi32>
    %50 = arith.cmpi sle, %49, %48 : vector<16x16xi32>
    %c0_20 = arith.constant 0 : index
    %c0_21 = arith.constant 0 : index
    %c0_22 = arith.constant 0 : index
    %51 = vector.load %arg8[%c0_20, %c0_21, %c0_22] : memref<1x32x32xbf16, #tpu.memory_space<vmem>>, vector<1x32x32xbf16>
    %52 = vector.shape_cast %51 : vector<1x32x32xbf16> to vector<32x32xbf16>
    %cst_23 = arith.constant 0.000000e+00 : f32
    %53 = vector.broadcast %cst_23 : f32 to vector<32x32xf32>
    %54 = vector.extract_strided_slice %41 {offsets = [0, 0, 0], sizes = [2, 16, 8], strides = [1, 1, 1]} : vector<2x16x32xbf16> to vector<2x16x8xbf16>
    %55 = vector.extract_strided_slice %44 {offsets = [0, 0, 0], sizes = [2, 16, 8], strides = [1, 1, 1]} : vector<2x16x32xbf16> to vector<2x16x8xbf16>
    "tpu.trace_start"() <{level = 10 : i32, message = "bqd,bkd->bqk"}> : () -> ()
    %cst_24 = arith.constant dense<0.000000e+00> : vector<2x16x16xf32>
    %56 = tpu.matmul %54, %55, %cst_24 {dimension_numbers = #tpu.dot_dimension_numbers<[2], [2], [1], [1], [0, 0, 0, 1, 1, 1], [0], [0]>} : vector<2x16x8xbf16>, vector<2x16x8xbf16>, vector<2x16x16xf32> -> vector<2x16x16xf32>
    "tpu.trace_stop"() : () -> ()
    %cst_25 = arith.constant 0.353553385 : f32
    %57 = vector.broadcast %cst_25 : f32 to vector<2x16x16xf32>
    %58 = arith.mulf %56, %57 : vector<2x16x16xf32>
    %cst_26 = arith.constant -1.000000e+30 : f32
    %59 = vector.shape_cast %50 : vector<16x16xi1> to vector<1x16x16xi1>
    %60 = vector.broadcast %59 : vector<1x16x16xi1> to vector<2x16x16xi1>
    %61 = vector.broadcast %cst_26 : f32 to vector<2x16x16xf32>
    %62 = arith.select %60, %58, %61 : vector<2x16x16xi1>, vector<2x16x16xf32>
    %cst_27 = arith.constant dense<0xFF800000> : vector<2x16xf32>
    %63 = vector.multi_reduction <maximumf>, %62, %cst_27 [2] : vector<2x16x16xf32> to vector<2x16xf32>
    %64 = vector.shape_cast %63 : vector<2x16xf32> to vector<2x16x1xf32>
    %65 = vector.broadcast %64 : vector<2x16x1xf32> to vector<2x16x16xf32>
    %66 = arith.subf %62, %65 : vector<2x16x16xf32>
    %67 = math.exp %66 : vector<2x16x16xf32>
    %cst_28 = arith.constant dense<0.000000e+00> : vector<2x16xf32>
    %68 = vector.multi_reduction <add>, %67, %cst_28 [2] : vector<2x16x16xf32> to vector<2x16xf32>
    %69 = vector.shape_cast %68 : vector<2x16xf32> to vector<2x16x1xf32>
    %70 = vector.broadcast %69 : vector<2x16x1xf32> to vector<2x16x16xf32>
    %71 = arith.divf %67, %70 : vector<2x16x16xf32>
    %72 = arith.truncf %71 : vector<2x16x16xf32> to vector<2x16x16xbf16>
    %73 = vector.extract_strided_slice %47 {offsets = [0, 0, 0], sizes = [2, 16, 8], strides = [1, 1, 1]} : vector<2x16x32xbf16> to vector<2x16x8xbf16>
    "tpu.trace_start"() <{level = 10 : i32, message = "bqk,bkd->bqd"}> : () -> ()
    %cst_29 = arith.constant dense<0.000000e+00> : vector<2x16x8xf32>
    %74 = tpu.matmul %72, %73, %cst_29 {dimension_numbers = #tpu.dot_dimension_numbers<[2], [1], [1], [2], [0, 0, 0, 1, 1, 2], [0], [0]>} : vector<2x16x16xbf16>, vector<2x16x8xbf16>, vector<2x16x8xf32> -> vector<2x16x8xf32>
    "tpu.trace_stop"() : () -> ()
    %75 = vector.shape_cast %74 : vector<2x16x8xf32> to vector<32x8xf32>
    %76 = arith.truncf %75 : vector<32x8xf32> to vector<32x8xbf16>
    %77 = vector.extract_strided_slice %52 {offsets = [0, 0], sizes = [8, 32], strides = [1, 1]} : vector<32x32xbf16> to vector<8x32xbf16>
    %cst_30 = arith.constant dense<0.000000e+00> : vector<32x32xf32>
    %78 = tpu.matmul %76, %77, %cst_30 {dimension_numbers = #tpu.dot_dimension_numbers<[1], [0], [0], [1], [0, 0, 1, 1], [], []>} : vector<32x8xbf16>, vector<8x32xbf16>, vector<32x32xf32> -> vector<32x32xf32>
    %79 = arith.addf %53, %78 : vector<32x32xf32>
    %80 = vector.extract_strided_slice %41 {offsets = [0, 0, 8], sizes = [2, 16, 8], strides = [1, 1, 1]} : vector<2x16x32xbf16> to vector<2x16x8xbf16>
    %81 = vector.extract_strided_slice %44 {offsets = [0, 0, 8], sizes = [2, 16, 8], strides = [1, 1, 1]} : vector<2x16x32xbf16> to vector<2x16x8xbf16>
    "tpu.trace_start"() <{level = 10 : i32, message = "bqd,bkd->bqk"}> : () -> ()
    %cst_31 = arith.constant dense<0.000000e+00> : vector<2x16x16xf32>
    %82 = tpu.matmul %80, %81, %cst_31 {dimension_numbers = #tpu.dot_dimension_numbers<[2], [2], [1], [1], [0, 0, 0, 1, 1, 1], [0], [0]>} : vector<2x16x8xbf16>, vector<2x16x8xbf16>, vector<2x16x16xf32> -> vector<2x16x16xf32>
    "tpu.trace_stop"() : () -> ()
    %cst_32 = arith.constant 0.353553385 : f32
    %83 = vector.broadcast %cst_32 : f32 to vector<2x16x16xf32>
    %84 = arith.mulf %82, %83 : vector<2x16x16xf32>
    %cst_33 = arith.constant -1.000000e+30 : f32
    %85 = vector.shape_cast %50 : vector<16x16xi1> to vector<1x16x16xi1>
    %86 = vector.broadcast %85 : vector<1x16x16xi1> to vector<2x16x16xi1>
    %87 = vector.broadcast %cst_33 : f32 to vector<2x16x16xf32>
    %88 = arith.select %86, %84, %87 : vector<2x16x16xi1>, vector<2x16x16xf32>
    %cst_34 = arith.constant dense<0xFF800000> : vector<2x16xf32>
    %89 = vector.multi_reduction <maximumf>, %88, %cst_34 [2] : vector<2x16x16xf32> to vector<2x16xf32>
    %90 = vector.shape_cast %89 : vector<2x16xf32> to vector<2x16x1xf32>
    %91 = vector.broadcast %90 : vector<2x16x1xf32> to vector<2x16x16xf32>
    %92 = arith.subf %88, %91 : vector<2x16x16xf32>
    %93 = math.exp %92 : vector<2x16x16xf32>
    %cst_35 = arith.constant dense<0.000000e+00> : vector<2x16xf32>
    %94 = vector.multi_reduction <add>, %93, %cst_35 [2] : vector<2x16x16xf32> to vector<2x16xf32>
    %95 = vector.shape_cast %94 : vector<2x16xf32> to vector<2x16x1xf32>
    %96 = vector.broadcast %95 : vector<2x16x1xf32> to vector<2x16x16xf32>
    %97 = arith.divf %93, %96 : vector<2x16x16xf32>
    %98 = arith.truncf %97 : vector<2x16x16xf32> to vector<2x16x16xbf16>
    %99 = vector.extract_strided_slice %47 {offsets = [0, 0, 8], sizes = [2, 16, 8], strides = [1, 1, 1]} : vector<2x16x32xbf16> to vector<2x16x8xbf16>
    "tpu.trace_start"() <{level = 10 : i32, message = "bqk,bkd->bqd"}> : () -> ()
    %cst_36 = arith.constant dense<0.000000e+00> : vector<2x16x8xf32>
    %100 = tpu.matmul %98, %99, %cst_36 {dimension_numbers = #tpu.dot_dimension_numbers<[2], [1], [1], [2], [0, 0, 0, 1, 1, 2], [0], [0]>} : vector<2x16x16xbf16>, vector<2x16x8xbf16>, vector<2x16x8xf32> -> vector<2x16x8xf32>
    "tpu.trace_stop"() : () -> ()
    %101 = vector.shape_cast %100 : vector<2x16x8xf32> to vector<32x8xf32>
    %102 = arith.truncf %101 : vector<32x8xf32> to vector<32x8xbf16>
    %103 = vector.extract_strided_slice %52 {offsets = [8, 0], sizes = [8, 32], strides = [1, 1]} : vector<32x32xbf16> to vector<8x32xbf16>
    %cst_37 = arith.constant dense<0.000000e+00> : vector<32x32xf32>
    %104 = tpu.matmul %102, %103, %cst_37 {dimension_numbers = #tpu.dot_dimension_numbers<[1], [0], [0], [1], [0, 0, 1, 1], [], []>} : vector<32x8xbf16>, vector<8x32xbf16>, vector<32x32xf32> -> vector<32x32xf32>
    %105 = arith.addf %79, %104 : vector<32x32xf32>
    %106 = vector.extract_strided_slice %41 {offsets = [0, 0, 16], sizes = [2, 16, 8], strides = [1, 1, 1]} : vector<2x16x32xbf16> to vector<2x16x8xbf16>
    %107 = vector.extract_strided_slice %44 {offsets = [0, 0, 16], sizes = [2, 16, 8], strides = [1, 1, 1]} : vector<2x16x32xbf16> to vector<2x16x8xbf16>
    "tpu.trace_start"() <{level = 10 : i32, message = "bqd,bkd->bqk"}> : () -> ()
    %cst_38 = arith.constant dense<0.000000e+00> : vector<2x16x16xf32>
    %108 = tpu.matmul %106, %107, %cst_38 {dimension_numbers = #tpu.dot_dimension_numbers<[2], [2], [1], [1], [0, 0, 0, 1, 1, 1], [0], [0]>} : vector<2x16x8xbf16>, vector<2x16x8xbf16>, vector<2x16x16xf32> -> vector<2x16x16xf32>
    "tpu.trace_stop"() : () -> ()
    %cst_39 = arith.constant 0.353553385 : f32
    %109 = vector.broadcast %cst_39 : f32 to vector<2x16x16xf32>
    %110 = arith.mulf %108, %109 : vector<2x16x16xf32>
    %cst_40 = arith.constant -1.000000e+30 : f32
    %111 = vector.shape_cast %50 : vector<16x16xi1> to vector<1x16x16xi1>
    %112 = vector.broadcast %111 : vector<1x16x16xi1> to vector<2x16x16xi1>
    %113 = vector.broadcast %cst_40 : f32 to vector<2x16x16xf32>
    %114 = arith.select %112, %110, %113 : vector<2x16x16xi1>, vector<2x16x16xf32>
    %cst_41 = arith.constant dense<0xFF800000> : vector<2x16xf32>
    %115 = vector.multi_reduction <maximumf>, %114, %cst_41 [2] : vector<2x16x16xf32> to vector<2x16xf32>
    %116 = vector.shape_cast %115 : vector<2x16xf32> to vector<2x16x1xf32>
    %117 = vector.broadcast %116 : vector<2x16x1xf32> to vector<2x16x16xf32>
    %118 = arith.subf %114, %117 : vector<2x16x16xf32>
    %119 = math.exp %118 : vector<2x16x16xf32>
    %cst_42 = arith.constant dense<0.000000e+00> : vector<2x16xf32>
    %120 = vector.multi_reduction <add>, %119, %cst_42 [2] : vector<2x16x16xf32> to vector<2x16xf32>
    %121 = vector.shape_cast %120 : vector<2x16xf32> to vector<2x16x1xf32>
    %122 = vector.broadcast %121 : vector<2x16x1xf32> to vector<2x16x16xf32>
    %123 = arith.divf %119, %122 : vector<2x16x16xf32>
    %124 = arith.truncf %123 : vector<2x16x16xf32> to vector<2x16x16xbf16>
    %125 = vector.extract_strided_slice %47 {offsets = [0, 0, 16], sizes = [2, 16, 8], strides = [1, 1, 1]} : vector<2x16x32xbf16> to vector<2x16x8xbf16>
    "tpu.trace_start"() <{level = 10 : i32, message = "bqk,bkd->bqd"}> : () -> ()
    %cst_43 = arith.constant dense<0.000000e+00> : vector<2x16x8xf32>
    %126 = tpu.matmul %124, %125, %cst_43 {dimension_numbers = #tpu.dot_dimension_numbers<[2], [1], [1], [2], [0, 0, 0, 1, 1, 2], [0], [0]>} : vector<2x16x16xbf16>, vector<2x16x8xbf16>, vector<2x16x8xf32> -> vector<2x16x8xf32>
    "tpu.trace_stop"() : () -> ()
    %127 = vector.shape_cast %126 : vector<2x16x8xf32> to vector<32x8xf32>
    %128 = arith.truncf %127 : vector<32x8xf32> to vector<32x8xbf16>
    %129 = vector.extract_strided_slice %52 {offsets = [16, 0], sizes = [8, 32], strides = [1, 1]} : vector<32x32xbf16> to vector<8x32xbf16>
    %cst_44 = arith.constant dense<0.000000e+00> : vector<32x32xf32>
    %130 = tpu.matmul %128, %129, %cst_44 {dimension_numbers = #tpu.dot_dimension_numbers<[1], [0], [0], [1], [0, 0, 1, 1], [], []>} : vector<32x8xbf16>, vector<8x32xbf16>, vector<32x32xf32> -> vector<32x32xf32>
    %131 = arith.addf %105, %130 : vector<32x32xf32>
    %132 = vector.extract_strided_slice %41 {offsets = [0, 0, 24], sizes = [2, 16, 8], strides = [1, 1, 1]} : vector<2x16x32xbf16> to vector<2x16x8xbf16>
    %133 = vector.extract_strided_slice %44 {offsets = [0, 0, 24], sizes = [2, 16, 8], strides = [1, 1, 1]} : vector<2x16x32xbf16> to vector<2x16x8xbf16>
    "tpu.trace_start"() <{level = 10 : i32, message = "bqd,bkd->bqk"}> : () -> ()
    %cst_45 = arith.constant dense<0.000000e+00> : vector<2x16x16xf32>
    %134 = tpu.matmul %132, %133, %cst_45 {dimension_numbers = #tpu.dot_dimension_numbers<[2], [2], [1], [1], [0, 0, 0, 1, 1, 1], [0], [0]>} : vector<2x16x8xbf16>, vector<2x16x8xbf16>, vector<2x16x16xf32> -> vector<2x16x16xf32>
    "tpu.trace_stop"() : () -> ()
    %cst_46 = arith.constant 0.353553385 : f32
    %135 = vector.broadcast %cst_46 : f32 to vector<2x16x16xf32>
    %136 = arith.mulf %134, %135 : vector<2x16x16xf32>
    %cst_47 = arith.constant -1.000000e+30 : f32
    %137 = vector.shape_cast %50 : vector<16x16xi1> to vector<1x16x16xi1>
    %138 = vector.broadcast %137 : vector<1x16x16xi1> to vector<2x16x16xi1>
    %139 = vector.broadcast %cst_47 : f32 to vector<2x16x16xf32>
    %140 = arith.select %138, %136, %139 : vector<2x16x16xi1>, vector<2x16x16xf32>
    %cst_48 = arith.constant dense<0xFF800000> : vector<2x16xf32>
    %141 = vector.multi_reduction <maximumf>, %140, %cst_48 [2] : vector<2x16x16xf32> to vector<2x16xf32>
    %142 = vector.shape_cast %141 : vector<2x16xf32> to vector<2x16x1xf32>
    %143 = vector.broadcast %142 : vector<2x16x1xf32> to vector<2x16x16xf32>
    %144 = arith.subf %140, %143 : vector<2x16x16xf32>
    %145 = math.exp %144 : vector<2x16x16xf32>
    %cst_49 = arith.constant dense<0.000000e+00> : vector<2x16xf32>
    %146 = vector.multi_reduction <add>, %145, %cst_49 [2] : vector<2x16x16xf32> to vector<2x16xf32>
    %147 = vector.shape_cast %146 : vector<2x16xf32> to vector<2x16x1xf32>
    %148 = vector.broadcast %147 : vector<2x16x1xf32> to vector<2x16x16xf32>
    %149 = arith.divf %145, %148 : vector<2x16x16xf32>
    %150 = arith.truncf %149 : vector<2x16x16xf32> to vector<2x16x16xbf16>
    %151 = vector.extract_strided_slice %47 {offsets = [0, 0, 24], sizes = [2, 16, 8], strides = [1, 1, 1]} : vector<2x16x32xbf16> to vector<2x16x8xbf16>
    "tpu.trace_start"() <{level = 10 : i32, message = "bqk,bkd->bqd"}> : () -> ()
    %cst_50 = arith.constant dense<0.000000e+00> : vector<2x16x8xf32>
    %152 = tpu.matmul %150, %151, %cst_50 {dimension_numbers = #tpu.dot_dimension_numbers<[2], [1], [1], [2], [0, 0, 0, 1, 1, 2], [0], [0]>} : vector<2x16x16xbf16>, vector<2x16x8xbf16>, vector<2x16x8xf32> -> vector<2x16x8xf32>
    "tpu.trace_stop"() : () -> ()
    %153 = vector.shape_cast %152 : vector<2x16x8xf32> to vector<32x8xf32>
    %154 = arith.truncf %153 : vector<32x8xf32> to vector<32x8xbf16>
    %155 = vector.extract_strided_slice %52 {offsets = [24, 0], sizes = [8, 32], strides = [1, 1]} : vector<32x32xbf16> to vector<8x32xbf16>
    %cst_51 = arith.constant dense<0.000000e+00> : vector<32x32xf32>
    %156 = tpu.matmul %154, %155, %cst_51 {dimension_numbers = #tpu.dot_dimension_numbers<[1], [0], [0], [1], [0, 0, 1, 1], [], []>} : vector<32x8xbf16>, vector<8x32xbf16>, vector<32x32xf32> -> vector<32x32xf32>
    %157 = arith.addf %131, %156 : vector<32x32xf32>
    %158 = arith.addf %4, %157 : vector<32x32xf32>
    %c0_52 = arith.constant 0 : index
    %c0_53 = arith.constant 0 : index
    %c0_54 = arith.constant 0 : index
    %159 = vector.load %arg9[%c0_52, %c0_53, %c0_54] : memref<1x1x32xf32, #tpu.memory_space<vmem>>, vector<1x1x32xf32>
    %160 = vector.shape_cast %159 : vector<1x1x32xf32> to vector<1x32xf32>
    %161 = vector.broadcast %160 : vector<1x32xf32> to vector<32x32xf32>
    %162 = arith.addf %158, %161 : vector<32x32xf32>
    %c0_55 = arith.constant 0 : index
    %c0_56 = arith.constant 0 : index
    %c0_57 = arith.constant 0 : index
    %163 = vector.load %arg10[%c0_55, %c0_56, %c0_57] : memref<1x1x32xf32, #tpu.memory_space<vmem>>, vector<1x1x32xf32>
    %164 = vector.shape_cast %163 : vector<1x1x32xf32> to vector<1x32xf32>
    %c0_58 = arith.constant 0 : index
    %c0_59 = arith.constant 0 : index
    %c0_60 = arith.constant 0 : index
    %165 = vector.load %arg11[%c0_58, %c0_59, %c0_60] : memref<1x1x32xf32, #tpu.memory_space<vmem>>, vector<1x1x32xf32>
    %166 = vector.shape_cast %165 : vector<1x1x32xf32> to vector<1x32xf32>
    %cst_61 = arith.constant dense<0.000000e+00> : vector<32xf32>
    %167 = vector.multi_reduction <add>, %162, %cst_61 [1] : vector<32x32xf32> to vector<32xf32>
    %168 = vector.shape_cast %167 : vector<32xf32> to vector<32x1xf32>
    %cst_62 = arith.constant 3.200000e+01 : f32
    %169 = vector.broadcast %cst_62 : f32 to vector<32x1xf32>
    %170 = arith.divf %168, %169 : vector<32x1xf32>
    %171 = vector.broadcast %170 : vector<32x1xf32> to vector<32x32xf32>
    %172 = arith.subf %162, %171 : vector<32x32xf32>
    %173 = arith.mulf %172, %172 : vector<32x32xf32>
    %cst_63 = arith.constant dense<0.000000e+00> : vector<32xf32>
    %174 = vector.multi_reduction <add>, %173, %cst_63 [1] : vector<32x32xf32> to vector<32xf32>
    %175 = vector.shape_cast %174 : vector<32xf32> to vector<32x1xf32>
    %cst_64 = arith.constant 3.200000e+01 : f32
    %176 = vector.broadcast %cst_64 : f32 to vector<32x1xf32>
    %177 = arith.divf %175, %176 : vector<32x1xf32>
    %178 = vector.broadcast %170 : vector<32x1xf32> to vector<32x32xf32>
    %179 = arith.subf %162, %178 : vector<32x32xf32>
    %cst_65 = arith.constant 9.99999974E-6 : f32
    %180 = vector.broadcast %cst_65 : f32 to vector<32x1xf32>
    %181 = arith.addf %177, %180 : vector<32x1xf32>
    %182 = math.rsqrt %181 : vector<32x1xf32>
    %183 = vector.broadcast %182 : vector<32x1xf32> to vector<32x32xf32>
    %184 = arith.mulf %179, %183 : vector<32x32xf32>
    %185 = vector.broadcast %164 : vector<1x32xf32> to vector<32x32xf32>
    %186 = arith.mulf %184, %185 : vector<32x32xf32>
    %187 = vector.broadcast %166 : vector<1x32xf32> to vector<32x32xf32>
    %188 = arith.addf %186, %187 : vector<32x32xf32>
    %189 = arith.truncf %188 : vector<32x32xf32> to vector<32x32xbf16>
    %c0_66 = arith.constant 0 : index
    %c0_67 = arith.constant 0 : index
    %c0_68 = arith.constant 0 : index
    %190 = vector.load %arg12[%c0_66, %c0_67, %c0_68] : memref<1x32x128xbf16, #tpu.memory_space<vmem>>, vector<1x32x128xbf16>
    %191 = vector.shape_cast %190 : vector<1x32x128xbf16> to vector<32x128xbf16>
    %cst_69 = arith.constant dense<0.000000e+00> : vector<32x128xf32>
    %192 = tpu.matmul %189, %191, %cst_69 {dimension_numbers = #tpu.dot_dimension_numbers<[1], [0], [0], [1], [0, 0, 1, 1], [], []>} : vector<32x32xbf16>, vector<32x128xbf16>, vector<32x128xf32> -> vector<32x128xf32>
    %c0_70 = arith.constant 0 : index
    %c0_71 = arith.constant 0 : index
    %c0_72 = arith.constant 0 : index
    %193 = vector.load %arg13[%c0_70, %c0_71, %c0_72] : memref<1x1x128xf32, #tpu.memory_space<vmem>>, vector<1x1x128xf32>
    %194 = vector.shape_cast %193 : vector<1x1x128xf32> to vector<1x128xf32>
    %195 = vector.broadcast %194 : vector<1x128xf32> to vector<32x128xf32>
    %196 = arith.addf %192, %195 : vector<32x128xf32>
    %cst_73 = arith.constant 1.702000e+00 : f32
    %197 = vector.broadcast %cst_73 : f32 to vector<32x128xf32>
    %198 = arith.mulf %197, %196 : vector<32x128xf32>
    %199 = arith.negf %198 : vector<32x128xf32>
    %200 = math.exp %199 : vector<32x128xf32>
    %cst_74 = arith.constant 1.000000e+00 : f32
    %201 = vector.broadcast %cst_74 : f32 to vector<32x128xf32>
    %202 = arith.addf %201, %200 : vector<32x128xf32>
    %203 = arith.divf %201, %202 : vector<32x128xf32>
    %204 = arith.mulf %196, %203 : vector<32x128xf32>
    %205 = arith.truncf %204 : vector<32x128xf32> to vector<32x128xbf16>
    %c0_75 = arith.constant 0 : index
    %c0_76 = arith.constant 0 : index
    %c0_77 = arith.constant 0 : index
    %206 = vector.load %arg14[%c0_75, %c0_76, %c0_77] : memref<1x128x32xbf16, #tpu.memory_space<vmem>>, vector<1x128x32xbf16>
    %207 = vector.shape_cast %206 : vector<1x128x32xbf16> to vector<128x32xbf16>
    %cst_78 = arith.constant dense<0.000000e+00> : vector<32x32xf32>
    %208 = tpu.matmul %205, %207, %cst_78 {dimension_numbers = #tpu.dot_dimension_numbers<[1], [0], [0], [1], [0, 0, 1, 1], [], []>} : vector<32x128xbf16>, vector<128x32xbf16>, vector<32x32xf32> -> vector<32x32xf32>
    %c0_79 = arith.constant 0 : index
    %c0_80 = arith.constant 0 : index
    %c0_81 = arith.constant 0 : index
    %209 = vector.load %arg15[%c0_79, %c0_80, %c0_81] : memref<1x1x32xf32, #tpu.memory_space<vmem>>, vector<1x1x32xf32>
    %210 = vector.shape_cast %209 : vector<1x1x32xf32> to vector<1x32xf32>
    %211 = vector.broadcast %210 : vector<1x32xf32> to vector<32x32xf32>
    %212 = arith.addf %208, %211 : vector<32x32xf32>
    %213 = arith.addf %162, %212 : vector<32x32xf32>
    %214 = vector.shape_cast %213 : vector<32x32xf32> to vector<2x16x32xf32>
    %c0_82 = arith.constant 0 : index
    %c0_83 = arith.constant 0 : index
    %c0_84 = arith.constant 0 : index
    %215 = vector.load %arg17[%c0_82, %c0_83, %c0_84] : memref<2x16x32xf32, #tpu.memory_space<vmem>>, vector<2x16x32xf32>
    tpu.vector_store %arg17[%c0_82, %c0_83, %c0_84], %214 {strides = array<i32>} : memref<2x16x32xf32, #tpu.memory_space<vmem>>, vector<2x16x32xf32>,
    %c0_85 = arith.constant 0 : index
    %c0_86 = arith.constant 0 : index
    %c0_87 = arith.constant 0 : index
    %216 = vector.load %arg16[%c0_85, %c0_86, %c0_87] : memref<2x16x32xf32, #tpu.memory_space<vmem>>, vector<2x16x32xf32>
    tpu.vector_store %arg16[%c0_85, %c0_86, %c0_87], %214 {strides = array<i32>} : memref<2x16x32xf32, #tpu.memory_space<vmem>>, vector<2x16x32xf32>,
    return
  }
  func.func @transform_0(%arg0: i32, %arg1: i32) -> (i32, i32, i32) {
    %c0_i32 = arith.constant 0 : i32
    %c0_i32_0 = arith.constant 0 : i32
    %c0_i32_1 = arith.constant 0 : i32
    return %arg0, %c0_i32, %c0_i32_0 : i32, i32, i32
  }
  func.func @transform_1(%arg0: i32, %arg1: i32) -> (i32, i32) {
    %c0_i32 = arith.constant 0 : i32
    %c0_i32_0 = arith.constant 0 : i32
    %c0_i32_1 = arith.constant 0 : i32
    return %c0_i32, %c0_i32_0 : i32, i32
  }
  func.func @transform_2(%arg0: i32, %arg1: i32) -> (i32, i32, i32) {
    %c0_i32 = arith.constant 0 : i32
    %c0_i32_0 = arith.constant 0 : i32
    %c0_i32_1 = arith.constant 0 : i32
    return %arg1, %c0_i32, %c0_i32_0 : i32, i32, i32
  }
  func.func @transform_3(%arg0: i32, %arg1: i32) -> (i32, i32, i32) {
    %c0_i32 = arith.constant 0 : i32
    %c0_i32_0 = arith.constant 0 : i32
    %c0_i32_1 = arith.constant 0 : i32
    return %arg1, %c0_i32, %c0_i32_0 : i32, i32, i32
  }
  func.func @transform_4(%arg0: i32, %arg1: i32) -> (i32, i32, i32) {
    %c0_i32 = arith.constant 0 : i32
    %c0_i32_0 = arith.constant 0 : i32
    %c0_i32_1 = arith.constant 0 : i32
    return %arg1, %c0_i32, %c0_i32_0 : i32, i32, i32
  }
  func.func @transform_5(%arg0: i32, %arg1: i32) -> (i32, i32, i32) {
    %c0_i32 = arith.constant 0 : i32
    %c0_i32_0 = arith.constant 0 : i32
    %c0_i32_1 = arith.constant 0 : i32
    return %arg1, %c0_i32, %c0_i32_0 : i32, i32, i32
  }
  func.func @transform_6(%arg0: i32, %arg1: i32) -> (i32, i32, i32) {
    %c0_i32 = arith.constant 0 : i32
    %c0_i32_0 = arith.constant 0 : i32
    %c0_i32_1 = arith.constant 0 : i32
    return %arg1, %c0_i32, %c0_i32_0 : i32, i32, i32
  }
  func.func @transform_7(%arg0: i32, %arg1: i32) -> (i32, i32, i32) {
    %c0_i32 = arith.constant 0 : i32
    %c0_i32_0 = arith.constant 0 : i32
    %c0_i32_1 = arith.constant 0 : i32
    return %arg1, %c0_i32, %c0_i32_0 : i32, i32, i32
  }
  func.func @transform_8(%arg0: i32, %arg1: i32) -> (i32, i32, i32) {
    %c0_i32 = arith.constant 0 : i32
    %c0_i32_0 = arith.constant 0 : i32
    %c0_i32_1 = arith.constant 0 : i32
    return %arg1, %c0_i32, %c0_i32_0 : i32, i32, i32
  }
  func.func @transform_9(%arg0: i32, %arg1: i32) -> (i32, i32, i32) {
    %c0_i32 = arith.constant 0 : i32
    %c0_i32_0 = arith.constant 0 : i32
    %c0_i32_1 = arith.constant 0 : i32
    return %arg1, %c0_i32, %c0_i32_0 : i32, i32, i32
  }
  func.func @transform_10(%arg0: i32, %arg1: i32) -> (i32, i32, i32) {
    %c0_i32 = arith.constant 0 : i32
    %c0_i32_0 = arith.constant 0 : i32
    %c0_i32_1 = arith.constant 0 : i32
    return %arg1, %c0_i32, %c0_i32_0 : i32, i32, i32
  }
  func.func @transform_11(%arg0: i32, %arg1: i32) -> (i32, i32, i32) {
    %c0_i32 = arith.constant 0 : i32
    %c0_i32_0 = arith.constant 0 : i32
    %c0_i32_1 = arith.constant 0 : i32
    return %arg1, %c0_i32, %c0_i32_0 : i32, i32, i32
  }
  func.func @transform_12(%arg0: i32, %arg1: i32) -> (i32, i32, i32) {
    %c0_i32 = arith.constant 0 : i32
    %c0_i32_0 = arith.constant 0 : i32
    %c0_i32_1 = arith.constant 0 : i32
    return %arg1, %c0_i32, %c0_i32_0 : i32, i32, i32
  }
  func.func @transform_13(%arg0: i32, %arg1: i32) -> (i32, i32, i32) {
    %c0_i32 = arith.constant 0 : i32
    %c0_i32_0 = arith.constant 0 : i32
    %c0_i32_1 = arith.constant 0 : i32
    return %arg1, %c0_i32, %c0_i32_0 : i32, i32, i32
  }
  func.func @transform_14(%arg0: i32, %arg1: i32) -> (i32, i32, i32) {
    %c0_i32 = arith.constant 0 : i32
    %c0_i32_0 = arith.constant 0 : i32
    %c0_i32_1 = arith.constant 0 : i32
    return %arg0, %c0_i32, %c0_i32_0 : i32, i32, i32
  }
}

</mosaic_0001>

<bundles_post_ra>
// kernel: tpu_custom_call.1
= control target key start
LH: loop header
LB: loop body
LE: loop exit
PB: predicated region body
PF: predicated region fallthrough
CT: control target
= control target key end

     0   :  { %s3705_s0 = inlined_call_operand.vmem [shape: f32[2,16,32], index: 0, kind: input, shape index: {}]   ;;  %s3706_s1 = inlined_call_operand.vmem [shape: f32[16,32], index: 1, kind: input, shape index: {}]   ;;  %s3707_s2 = inlined_call_operand.vmem [shape: f32[2,1,32], index: 2, kind: input, shape index: {}]   ;;  %s3708_s3 = inlined_call_operand.vmem [shape: f32[2,1,32], index: 3, kind: input, shape index: {}]   ;;  %s3709_s4 = inlined_call_operand.vmem [shape: bf16[2,32,96], index: 4, kind: input, shape index: {}]   ;;  %s3710_s5 = inlined_call_operand.vmem [shape: f32[2,1,96], index: 5, kind: input, shape index: {}]   ;;  %s3711_s6 = inlined_call_operand.vmem [shape: bf16[2,32,32], index: 6, kind: input, shape index: {}]   ;;  %s3712_s7 = inlined_call_operand.vmem [shape: f32[2,1,32], index: 7, kind: input, shape index: {}]   ;;  %s3713_s8 = inlined_call_operand.vmem [shape: f32[2,1,32], index: 8, kind: input, shape index: {}]   ;;  %s3714_s9 = inlined_call_operand.vmem [shape: f32[2,1,32], index: 9, kind: input, shape index: {}]   ;;  %s3715_s10 = inlined_call_operand.vmem [shape: bf16[2,32,128], index: 10, kind: input, shape index: {}]   ;;  %s3716_s11 = inlined_call_operand.vmem [shape: f32[2,1,128], index: 11, kind: input, shape index: {}]   ;;  %s3717_s12 = inlined_call_operand.vmem [shape: bf16[2,128,32], index: 12, kind: input, shape index: {}]   ;;  %s3718_s13 = inlined_call_operand.vmem [shape: f32[2,1,32], index: 13, kind: input, shape index: {}]   ;;  %s3719_s14 = inlined_call_operand.hbm [shape: f32[2,16,32], index: 14, kind: output, shape index: {}]  }
   0x1   :  { %3724 = sst [smem:[#allocation10_spill]] %s3708_s3 }
   0x2   :  { %3725 = sst [smem:[#allocation11_spill]] %s3709_s4 }
   0x3   :  { %3726 = sst [smem:[#allocation12_spill]] %s3711_s6 }
   0x4   :  { %3727 = sst [smem:[#allocation13_spill]] %s3719_s14 }
   0x5   :  { %19 = vsyncpa [#allocation4], 0  ;;  %s3247_s29 = smov 0   ;;  %s3249_s30 = smov 0  }
   0x6   :  { %s3251_s15 = smov 0  }
   0x7 LB: > { %3728 = sst [smem:[#allocation6_spill]] %s3150_s30  ;;  %s34_s17 = sadd.s32 1, %s3150_s30  ;;  %s3154_s15 = sphi %s3251_s15, %s25_s15   ;;  %s3150_s30 = sphi %s3249_s30, %s3752_s30   ;;  %s3146_s29 = sphi %s3247_s29, %s3751_s29  }
   0x8   : > { %3729 = sst [smem:[#allocation7_spill]] %s3154_s15  ;;  %p35_p0 = scmp.ge.s32.totalorder %s34_s17, 2 }
   0x9   : > { %p2640_p1 = scmp.ge.s32.totalorder %s3154_s15, 1  ;;  %p531_p2 = scmp.lt.s32.totalorder %s3154_s15, 3 }
   0xa   : > { %s3754_s17 = smov (%p35_p0, %s34_s17), 0 }
   0xb   : > { %3730 = sst [smem:[#allocation8_spill]] %s3754_s17  ;;  %p532_p3 = pnand %p2640_p1, %p531_p2 }
   0xd   : > { %535 = sbr.rel (%p532_p3) target bundleno = 4337 (0x10f1), region = 76 }
  0x14   : > { %p624_p4 = scmp.lt.s32.totalorder %s3146_s29, 1  ;;  %s3732_s4 = sld [smem:[#allocation11_spill]] }
  0x15   : > { %s3733_s6 = sld [smem:[#allocation12_spill]]  ;;  %p2649_p5 = scmp.ne.s32.totalorder %s3146_s29, 0 }
  0x16   : > { %s3266_s18 = scalar_select %p624_p4, %s3146_s29, 1 }
  0x17   : > { %673 = sbr.rel (%p2649_p5) target bundleno = 30 (0x1e), region = 80  ;;  %v674_v0 = vld [vmem:[%s3705_s0] sm:$0xff] (!%p2649_p5)  ;;  %vm684_vm0 = vcmask (!%p2649_p5), 261120   ;;  %v675_v2 = vld [vmem:[%s3705_s0 + $0x8] sm:$0xff] (!%p2649_p5)  ;;  %v676_v5 = vld [vmem:[%s3705_s0 + $0x10] sm:$0xff] (!%p2649_p5) }
  0x18   : > { %s2706_s25 = sshll.u32 %s3266_s18, 4  ;;  %s648_s3 = scalar_lea.vmem %s3713_s8, %s3266_s18  ;;  %v678_v1 = vld [vmem:[%s3706_s1] sm:$0xff] (!%p2649_p5)  ;;  %v679_v4 = vld [vmem:[%s3706_s1 + $0x8] sm:$0xff] (!%p2649_p5)  ;;  %v677_v6 = vld [vmem:[%s3705_s0 + $0x18] sm:$0xff] (!%p2649_p5) }
  0x19   : > { %s651_s28 = scalar_lea.vmem %s3714_s9, %s3266_s18  ;;  %s667_s26 = scalar_lea.vmem %s3718_s13, %s3266_s18  ;;  %v680_v3 = vadd.f32 (!%p2649_p5), %v678_v1, %v674_v0  ;;  %v681_v7 = vadd.f32 (!%p2649_p5), %v679_v4, %v675_v2  ;;  %v682_v8 = vadd.f32 (!%p2649_p5), %v678_v1, %v676_v5  ;;  %v683_v9 = vadd.f32 (!%p2649_p5), %v679_v4, %v677_v6 }
  0x1a   : > { %s3284_s16 = scalar_lea.vmem %s3732_s4, %s2706_s25  ;;  %s3306_s4 = scalar_lea.vmem %s3715_s10, %s2706_s25 }
  0x1b   : > { %s3289_s14 = scalar_lea.vmem %s3733_s6, %s2706_s25  ;;  %s659_s6 = scalar_lea.vmem %s3716_s11, %s3266_s18  ;;  %685 = vst.msk [vmem:[#allocation2] sm:$0xff] (!%p2649_p5), %vm684_vm0, %v680_v3  ;;  %686 = vst.msk [vmem:[#allocation2 + $0x8] sm:$0xff] (!%p2649_p5), %vm684_vm0, %v681_v7 }
  0x1c   : > { %3734 = sst [smem:[#allocation9_spill]] %s3289_s14  ;;  %s2709_s14 = sshll.u32 %s3266_s18, 6  ;;  %687 = vst.msk [vmem:[#allocation2 + $0x10] sm:$0xff] (!%p2649_p5), %vm684_vm0, %v682_v8  ;;  %688 = vst.msk [vmem:[#allocation2 + $0x18] sm:$0xff] (!%p2649_p5), %vm684_vm0, %v683_v9 }
  0x1d   : > { %s3316_s22 = scalar_lea.vmem %s3717_s12, %s2709_s14 }
  0x1e PF: > { %vm695_vm1 = vcmask 261120   ;;  %v2990_v38 = vld [vmem:[%s3284_s16] sm:$0xff]   ;;  %v2991_v39 = vld [vmem:[%s3284_s16 + $0x8] sm:$0xff]   ;;  %s3735_s19 = scalar_lea.vmem %s3707_s2, %s3266_s18  ;;  %s3736_s30 = sld [smem:[#allocation10_spill]]  ;;  %v3156_v8 = vmov 0.0   ;;  %vm3157_vm2 = vmmov 0  }
  0x1f   : > { %2772 = vmatprep.subr.bf16.mxu1 %v2990_v38  ;;  %v2650_v54 = vld [vmem:[%s3735_s19] ss:$0 sm:$0xff]  ;;  %2798 = vmatprep.subr.bf16.mxu0 %v3156_v8  ;;  %s3738_s29 = scalar_lea.vmem %s3710_s5, %s3266_s18  ;;  %s3158_s21 = smov 96   ;;  %vm865_vm3 = vcmask 64512   ;;  %vm975_vm5 = vcmask 130048   ;;  %vm1376_vm7 = vcmask 1043456  }
  0x20   : > { %2773 = vmatpush3.bf16.msra.mxu1 %v2990_v38  ;;  %2800 = vmatprep.mubr.msk.bf16.mxu0 %vm3157_vm2, %v3156_v8  ;;  %s3159_s24 = smov 88   ;;  %s3160_s23 = smov 64  }
  0x21   : > { %2774 = vmatprep.subr.bf16.mxu1 %v2991_v39  ;;  %s3161_s16 = smov 120   ;;  %s3162_s27 = smov 80  }
  0x22   : > { %v689_v10 = vld [vmem:[#allocation2] sm:$0xff]  ;;  %v690_v12 = vld [vmem:[#allocation2 + $0x8] sm:$0xff]  ;;  %s3163_s19 = smov 112   ;;  %s3164_s25 = smov 56  }
  0x23   : > { %v691_v11 = vld [vmem:[#allocation2 + $0x10] sm:$0xff]  ;;  %v696_v13 = vsel %vm695_vm1, %v689_v10, 0.0  ;;  %v692_v15 = vld [vmem:[#allocation2 + $0x18] sm:$0xff]  ;;  %v699_v16 = vsel %vm695_vm1, %v690_v12, 0.0  ;;  %s3743_s20 = sld [smem:[#allocation9_spill]]  ;;  %s3167_s14 = smov 104  }
  0x24   : > { %v702_v14 = vsel %vm695_vm1, %v691_v11, 0.0  ;;  %697 = vadd.xlane.f32.xlu0 %v696_v13  ;;  %v705_v17 = vsel %vm695_vm1, %v692_v15, 0.0  ;;  %2775 = vmatpush3.bf16.msra.mxu1 %v2991_v39  ;;  %s3737_s17 = scalar_lea.vmem %s3736_s30, %s3266_s18  ;;  %s3165_s30 = smov 48  }
  0x25   : > { %703 = vadd.xlane.f32.xlu1 %v702_v14  ;;  %v2651_v60 = vld [vmem:[%s3737_s17] ss:$0 sm:$0xff]  ;;  %2780 = vmatprep.subr.bf16.mxu1 %v3156_v8  ;;  %s3166_s17 = smov 72   ;;  %s3168_s15 = smov 40  }
  0x28   : > { %700 = vadd.xlane.f32.xlu0 %v699_v16 }
  0x29   : > { %706 = vadd.xlane.f32.xlu1 %v705_v17 }
  0xb1   : > { %v698_v18 = vpop.xlane.xlu0 %697 }
  0xb2   : > { %v704_v19 = vpop.xlane.xlu1 %703  ;;  %v709_v20 = vmul.f32 0.03125, %v698_v18 }
  0xb3   : > { %v711_v21 = vmul.f32 0.03125, %v704_v19 }
  0xb4   : > { %v713_v22 = vsub.f32 %v689_v10, %v709_v20  ;;  %v2652_v10 = vld [vmem:[%s3738_s29] ss:$0 sm:$0xff] }
  0xb5   : > { %v715_v23 = vsub.f32 %v691_v11, %v711_v21  ;;  %v701_v24 = vpop.xlane.xlu0 %700 }
  0xb6   : > { %v707_v25 = vpop.xlane.xlu1 %706  ;;  %v710_v26 = vmul.f32 0.03125, %v701_v24  ;;  %v717_v28 = vmul.f32 %v713_v22, %v713_v22 }
  0xb7   : > { %v712_v27 = vmul.f32 0.03125, %v707_v25  ;;  %v719_v29 = vmul.f32 %v715_v23, %v715_v23  ;;  %v851_v25 = vlaneseq }
  0xb8   : > { %v714_v30 = vsub.f32 %v690_v12, %v710_v26  ;;  %v721_v32 = vsel %vm695_vm1, %v717_v28, 0.0 }
  0xb9   : > { %v716_v31 = vsub.f32 %v692_v15, %v712_v27  ;;  %722 = vadd.xlane.f32.xlu0 %v721_v32  ;;  %v727_v33 = vsel %vm695_vm1, %v719_v29, 0.0  ;;  %v852_v29 = vshrl.u32 %v851_v25, 7 }
  0xba   : > { %v718_v34 = vmul.f32 %v714_v30, %v714_v30 }
  0xbb   : > { %v720_v35 = vmul.f32 %v716_v31, %v716_v31  ;;  %v853_v32 = vadd.s32 8, %v852_v29 }
  0xbc   : > { %v724_v36 = vsel %vm695_vm1, %v718_v34, 0.0 }
  0xbd   : > { %728 = vadd.xlane.f32.xlu0 %v727_v33  ;;  %725 = vadd.xlane.f32.xlu1 %v724_v36  ;;  %v730_v37 = vsel %vm695_vm1, %v720_v35, 0.0 }
  0xc1   : > { %731 = vadd.xlane.f32.xlu1 %v730_v37 }
 0x146   : > { %v723_v40 = vpop.xlane.xlu0 %722 }
 0x147   : > { %v733_v41 = vmul.f32 0.03125, %v723_v40 }
 0x149   : > { %v737_v42 = vadd.f32 1e-05, %v733_v41 }
 0x14a   : > { %v726_v43 = vpop.xlane.xlu1 %725  ;;  %v729_v44 = vpop.xlane.xlu0 %728 }
 0x14b   : > { %3002 = vrsqrt.f32 %v737_v42  ;;  %v734_v45 = vmul.f32 0.03125, %v726_v43  ;;  %v735_v46 = vmul.f32 0.03125, %v729_v44 }
 0x14d   : > { %v738_v47 = vadd.f32 1e-05, %v734_v45  ;;  %v739_v48 = vadd.f32 1e-05, %v735_v46 }
 0x14e   : > { %v732_v49 = vpop.xlane.xlu1 %731 }
 0x14f   : > { %3004 = vrsqrt.f32 %v738_v47  ;;  %v736_v50 = vmul.f32 0.03125, %v732_v49 }
 0x150   : > { %3006 = vrsqrt.f32 %v739_v48 }
 0x151   : > { %v740_v51 = vadd.f32 1e-05, %v736_v50 }
 0x153   : > { %3008 = vrsqrt.f32 %v740_v51 }
 0x155   : > { %v3003_v52 = vpop.eup %3002 }
 0x156   : > { %v745_v53 = vmul.f32 %v3003_v52, %v713_v22 }
 0x158   : > { %v755_v58 = vmul.f32 %v2650_v54, %v745_v53 }
 0x159   : > { %v3005_v55 = vpop.eup %3004 }
 0x15a   : > { %v3007_v56 = vpop.eup %3006  ;;  %v746_v57 = vmul.f32 %v3005_v55, %v714_v30  ;;  %v765_v0 = vadd.f32 %v2651_v60, %v755_v58  ;;  %v855_v30 = vand.u32 127, %v851_v25 }
 0x15b   : > { %v747_v59 = vmul.f32 %v3007_v56, %v715_v23 }
 0x15c   : > { %v756_v61 = vmul.f32 %v2650_v54, %v746_v57  ;;  %vm3391_vm4 = vcmp.le.s32.totalorder %v855_v30, %v852_v29  ;;  %vm3398_vm6 = vcmp.le.s32.totalorder %v855_v30, %v853_v32 }
 0x15d   : > { %v3009_v62 = vpop.eup %3008  ;;  %v757_v2 = vmul.f32 %v2650_v54, %v747_v59 }
 0x15e   : > { %v748_v63 = vmul.f32 %v3009_v62, %v716_v31  ;;  %v766_v1 = vadd.f32 %v2651_v60, %v756_v61 }
 0x15f   : > { %v767_v5 = vadd.f32 %v2651_v60, %v757_v2 }
 0x160   : > { %v769_v3 = vpack.c.bf16 %v766_v1, %v765_v0  ;;  %v758_v4 = vmul.f32 %v2650_v54, %v748_v63 }
 0x162   : > { %2776 = vmatprep.mubr.msk.bf16.mxu1 %vm695_vm1, %v769_v3  ;;  %v768_v6 = vadd.f32 %v2651_v60, %v758_v4 }
 0x164   : > { %v770_v7 = vpack.c.bf16 %v768_v6, %v767_v5 }
 0x166   : > { %2777 = vmatmul.mubr.msk.bf16.vlgmr.msra.gmra.mrb[0].mxu1 %vm695_vm1, %v770_v7 }
 0x167   : > { %2782 = vmatprep.mubr.msk.bf16.mxu1 %vm3157_vm2, %v3156_v8 }
 0x239   : > { %v2778_v9 = vpop.f32.mrb[0].mxu1 }
 0x23a   : > { %v834_v11 = vpop.f32.mrb[1].mxu1  ;;  %v843_v13 = vadd.f32 %v2778_v9, %v2652_v10 }
 0x23b   : > { %v2779_v12 = vpop.f32.mrb[2].mxu1  ;;  %v835_v16 = vadd.f32 %v2652_v10, %v834_v11 }
 0x23c   : > { %v846_v14 = vadd.f32 %v2779_v12, %v2652_v10  ;;  %v837_v15 = vpop.f32.mrb[3].mxu1 }
 0x23d   : > { %v838_v17 = vadd.f32 %v2652_v10, %v837_v15 }
 0x23e   : > { %v3373_v18 = vpack.c.bf16 %v846_v14, %v843_v13 }
 0x23f   : > { %v3375_v19 = vpack.c.bf16 %v838_v17, %v835_v16 }
 0x240   : > { %914 = vrot.lane.b32.xlu1 %v3373_v18, %s3158_s21 }
 0x241   : > { %863 = vrot.lane.b32.xlu0 %v3375_v19, %s3158_s21 }
 0x2b2   : > { %v915_v22 = vpop.permute.xlu1 %914 }
 0x2b3   : > { %v864_v20 = vpop.permute.xlu0 %863  ;;  %v920_v23 = vsel %vm865_vm3, %v915_v22, 0 }
 0x2b4   : > { %v870_v21 = vsel %vm865_vm3, %v864_v20, 0 }
 0x2b5   : > { %2781 = vmatpush3.bf16.xpose.msra.mxu1 %v870_v21 }
 0x2b6   : > { %2786 = vmatprep.subr.bf16.mxu1 %v3156_v8 }
 0x2bc   : > { %2783 = vmatmul.mubr.msk.bf16.vlgmr.msra.gmra.mrb[4].mxu1 %vm865_vm3, %v3375_v19 }
 0x2bd   : > { %2787 = vmatpush3.bf16.xpose.msra.mxu1 %v920_v23  ;;  %2788 = vmatprep.mubr.msk.bf16.mxu1 %vm3157_vm2, %v3156_v8 }
 0x2be   : > { %2792 = vmatprep.subr.bf16.mxu1 %v3156_v8 }
 0x2c4   : > { %2789 = vmatmul.mubr.msk.bf16.vlgmr.msra.gmra.mrb[8].mxu1 %vm865_vm3, %v3373_v18 }
 0x2c5   : > { %2794 = vmatprep.mubr.msk.bf16.mxu1 %vm3157_vm2, %v3156_v8 }
 0x38f   : > { %v906_v24 = vpop.f32.mrb[4].mxu1 }
 0x390   : > { %v2784_v26 = vpop.f32.mrb[5].mxu1  ;;  %v963_v56 = vmul.f32 0.35355338, %v906_v24 }
 0x391   : > { %v909_v27 = vpop.f32.mrb[6].mxu1 }
 0x392   : > { %v2785_v28 = vpop.f32.mrb[7].mxu1  ;;  %v964_v54 = vmul.f32 0.35355338, %v909_v27  ;;  %v971_v58 = vsel %vm3391_vm4, %v963_v56, -1e+30 }
 0x393   : > { %v976_v59 = vsel %vm975_vm5, %v971_v58, -inf }
 0x394   : > { %v972_v55 = vsel %vm3398_vm6, %v964_v54, -1e+30 }
 0x395   : > { %v979_v57 = vsel %vm975_vm5, %v972_v55, -inf }
 0x397   : > { %v956_v31 = vpop.f32.mrb[8].mxu1 }
 0x398   : > { %v965_v33 = vmul.f32 0.35355338, %v956_v31  ;;  %v2790_v34 = vpop.f32.mrb[9].mxu1 }
 0x399   : > { %v959_v35 = vpop.f32.mrb[10].mxu1 }
 0x39a   : > { %v966_v37 = vmul.f32 0.35355338, %v959_v35  ;;  %v2791_v38 = vpop.f32.mrb[11].mxu1  ;;  %v973_v39 = vsel %vm3391_vm4, %v965_v33, -1e+30 }
 0x39b   : > { %v982_v40 = vsel %vm975_vm5, %v973_v39, -inf }
 0x39c   : > { %983 = vmax.xlane.f32.xlu1 %v982_v40  ;;  %v974_v42 = vsel %vm3398_vm6, %v966_v37, -1e+30 }
 0x39d   : > { %v985_v43 = vsel %vm975_vm5, %v974_v42, -inf }
 0x39e   : > { %986 = vmax.xlane.f32.xlu0 %v985_v43 }
 0x429   : > { %v984_v44 = vpop.xlane.xlu1 %983 }
 0x42a   : > { %v990_v45 = vsub.f32 %v973_v39, %v984_v44 }
 0x42b   : > { %v987_v46 = vpop.xlane.xlu0 %986 }
 0x42c   : > { %v996_v47 = vmul.f32 1.442695, %v990_v45  ;;  %v991_v48 = vsub.f32 %v974_v42, %v987_v46 }
 0x42e   : > { %3010 = vpow2.f32 %v996_v47  ;;  %v998_v49 = vmul.f32 1.442695, %v991_v48 }
 0x430   : > { %3012 = vpow2.f32 %v998_v49 }
 0x438   : > { %v3011_v50 = vpop.eup %3010 }
 0x439   : > { %v1006_v51 = vsel %vm975_vm5, %v3011_v50, 0.0 }
 0x43a   : > { %v3013_v52 = vpop.eup %3012  ;;  %1007 = vadd.xlane.f32.xlu0 %v1006_v51 }
 0x43b   : > { %v1009_v53 = vsel %vm975_vm5, %v3013_v52, 0.0 }
 0x43c   : > { %1010 = vadd.xlane.f32.xlu1 %v1009_v53 }
 0x44d   : > { %1171 = vrot.lane.b32.xlu1 %v3373_v18, %s3159_s24 }
 0x450   : > { %1069 = vrot.lane.b32.xlu0 %v3373_v18, %s3160_s23 }
 0x451   : > { %1169 = vrot.lane.b32.xlu1 %v3373_v18, %s3161_s16 }
 0x46f   : > { %980 = vmax.xlane.f32.xlu0 %v979_v57 }
 0x475   : > { %977 = vmax.xlane.f32.xlu1 %v976_v59 }
 0x486   : > { %1022 = vrot.lane.b32.xlu1 %v3375_v19, %s3160_s23 }
 0x48a   : > { %1118 = vrot.lane.b32.xlu1 %v3375_v19, %s3161_s16 }
 0x4c7   : > { %v1008_v60 = vpop.xlane.xlu0 %1007 }
 0x4c8   : > { %3014 = vrcp.f32 %v1008_v60 }
 0x4c9   : > { %v1011_v61 = vpop.xlane.xlu1 %1010 }
 0x4ca   : > { %3016 = vrcp.f32 %v1011_v61 }
 0x4cb   : > { %v1070_v62 = vpop.permute.xlu0 %1069 }
 0x4cc   : > { %2799 = vmatpush3.bf16.msra.mxu0 %v1070_v62 }
 0x4cd   : > { %2810 = vmatprep.subr.bf16.mxu0 %v3156_v8  ;;  %v1172_v3 = vpop.permute.xlu1 %1171 }
 0x4ce   : > { %v1177_v5 = vsel %vm865_vm3, %v1172_v3, 0 }
 0x4d1   : > { %v1170_v6 = vpop.permute.xlu1 %1169 }
 0x4d2   : > { %v3015_v63 = vpop.eup %3014 }
 0x4d3   : > { %v1017_v1 = vmul.f32 %v3015_v63, %v3011_v50 }
 0x4d4   : > { %v3017_v0 = vpop.eup %3016 }
 0x4d5   : > { %v1019_v2 = vmul.f32 %v3017_v0, %v3013_v52 }
 0x4d7   : > { %v1021_v4 = vpack.c.bf16 %v1019_v2, %v1017_v1 }
 0x4d9   : > { %2801 = vmatmul.mubr.msk.bf16.vlgmr.msra.gmra.mrb[0].mxu0 %vm975_vm5, %v1021_v4 }
 0x4da   : > { %2811 = vmatpush3.bf16.xpose.msra.mxu0 %v1177_v5  ;;  %2812 = vmatprep.mubr.msk.bf16.mxu0 %vm3157_vm2, %v3156_v8 }
 0x4db   : > { %2822 = vmatprep.subr.bf16.mxu0 %v3156_v8 }
 0x4e1   : > { %2813 = vmatmul.mubr.msk.bf16.vlgmr.msra.gmra.mrb[4].mxu0 %vm865_vm3, %v1170_v6 }
 0x4e2   : > { %2824 = vmatprep.mubr.msk.bf16.mxu0 %vm3157_vm2, %v3156_v8 }
 0x4fc   : > { %v981_v7 = vpop.xlane.xlu0 %980 }
 0x4fd   : > { %v989_v9 = vsub.f32 %v972_v55, %v981_v7 }
 0x4ff   : > { %v994_v12 = vmul.f32 1.442695, %v989_v9 }
 0x502   : > { %v978_v10 = vpop.xlane.xlu1 %977 }
 0x503   : > { %v988_v11 = vsub.f32 %v971_v58, %v978_v10 }
 0x505   : > { %v992_v13 = vmul.f32 1.442695, %v988_v11 }
 0x506   : > { %v1023_v14 = vpop.permute.xlu1 %1022 }
 0x507   : > { %3018 = vpow2.f32 %v992_v13  ;;  %2793 = vmatpush3.bf16.msra.mxu1 %v1023_v14 }
 0x508   : > { %2804 = vmatprep.subr.bf16.mxu1 %v3156_v8  ;;  %3020 = vpow2.f32 %v994_v12 }
 0x50a   : > { %v1119_v47 = vpop.permute.xlu1 %1118 }
 0x511   : > { %v3019_v15 = vpop.eup %3018 }
 0x512   : > { %v1000_v16 = vsel %vm975_vm5, %v3019_v15, 0.0  ;;  %v3021_v17 = vpop.eup %3020 }
 0x513   : > { %1001 = vadd.xlane.f32.xlu0 %v1000_v16  ;;  %v1003_v20 = vsel %vm975_vm5, %v3021_v17, 0.0 }
 0x517   : > { %1004 = vadd.xlane.f32.xlu0 %v1003_v20 }
 0x52d   : > { %1120 = vrot.lane.b32.xlu0 %v3375_v19, %s3159_s24  ;;  %s3744_s24 = scalar_lea.vmem %s3712_s7, %s3266_s18 }
 0x5a0   : > { %v1002_v21 = vpop.xlane.xlu0 %1001 }
 0x5a1   : > { %3022 = vrcp.f32 %v1002_v21 }
 0x5a4   : > { %v1005_v22 = vpop.xlane.xlu0 %1004 }
 0x5a5   : > { %3024 = vrcp.f32 %v1005_v22 }
 0x5a8   : > { %v1121_v32 = vpop.permute.xlu0 %1120 }
 0x5a9   : > { %v1126_v34 = vsel %vm865_vm3, %v1121_v32, 0 }
 0x5ab   : > { %v3023_v24 = vpop.eup %3022 }
 0x5ac   : > { %v3433_v23 = vpop.f32.mrb[0].mxu0  ;;  %v1013_v30 = vmul.f32 %v3023_v24, %v3019_v15 }
 0x5ad   : > { %v2802_v25 = vpop.f32.mrb[1].mxu0 }
 0x5ae   : > { %v3435_v26 = vpop.f32.mrb[2].mxu0 }
 0x5af   : > { %v3025_v27 = vpop.eup %3024  ;;  %v1117_v28 = vpack.c.bf16 %v3435_v26, %v3433_v23  ;;  %v2803_v29 = vpop.f32.mrb[3].mxu0 }
 0x5b0   : > { %v1015_v31 = vmul.f32 %v3025_v27, %v3021_v17 }
 0x5b2   : > { %v1020_v33 = vpack.c.bf16 %v1015_v31, %v1013_v30 }
 0x5b4   : > { %2795 = vmatmul.mubr.msk.bf16.vlgmr.msra.gmra.mrb[12].mxu1 %vm975_vm5, %v1020_v33  ;;  %v1213_v35 = vpop.f32.mrb[4].mxu0 }
 0x5b5   : > { %2805 = vmatpush3.bf16.xpose.msra.mxu1 %v1126_v34  ;;  %v1222_v37 = vmul.f32 0.35355338, %v1213_v35  ;;  %v2814_v38 = vpop.f32.mrb[5].mxu0  ;;  %2806 = vmatprep.mubr.msk.bf16.mxu1 %vm3157_vm2, %v3156_v8 }
 0x5b6   : > { %v1216_v39 = vpop.f32.mrb[6].mxu0  ;;  %2816 = vmatprep.subr.bf16.mxu1 %v3156_v8 }
 0x5b7   : > { %v1223_v40 = vmul.f32 0.35355338, %v1216_v39  ;;  %v2815_v42 = vpop.f32.mrb[7].mxu0  ;;  %v1226_v43 = vsel %vm3391_vm4, %v1222_v37, -1e+30 }
 0x5b8   : > { %v1234_v44 = vsel %vm975_vm5, %v1226_v43, -inf }
 0x5b9   : > { %1235 = vmax.xlane.f32.xlu1 %v1234_v44  ;;  %v1227_v45 = vsel %vm3398_vm6, %v1223_v40, -1e+30 }
 0x5ba   : > { %v1237_v46 = vsel %vm975_vm5, %v1227_v45, -inf }
 0x5bb   : > { %1238 = vmax.xlane.f32.xlu0 %v1237_v46 }
 0x5bc   : > { %2807 = vmatmul.mubr.msk.bf16.vlgmr.msra.gmra.mrb[16].mxu1 %vm865_vm3, %v1119_v47 }
 0x5bd   : > { %2818 = vmatprep.mubr.msk.bf16.mxu1 %vm3157_vm2, %v3156_v8 }
 0x5ca   : > { %1489 = vrot.lane.b32.xlu1 %v3375_v19, %s3162_s27 }
 0x646   : > { %v1236_v48 = vpop.xlane.xlu1 %1235 }
 0x647   : > { %v1242_v49 = vsub.f32 %v1226_v43, %v1236_v48 }
 0x648   : > { %v1239_v50 = vpop.xlane.xlu0 %1238 }
 0x649   : > { %v1248_v51 = vmul.f32 1.442695, %v1242_v49  ;;  %v1243_v52 = vsub.f32 %v1227_v45, %v1239_v50 }
 0x64a   : > { %v1490_v10 = vpop.permute.xlu1 %1489 }
 0x64b   : > { %3026 = vpow2.f32 %v1248_v51  ;;  %v1250_v53 = vmul.f32 1.442695, %v1243_v52  ;;  %v1495_v22 = vsel %vm865_vm3, %v1490_v10, 0 }
 0x64d   : > { %3028 = vpow2.f32 %v1250_v53 }
 0x655   : > { %v3027_v54 = vpop.eup %3026 }
 0x656   : > { %v1258_v55 = vsel %vm975_vm5, %v3027_v54, 0.0 }
 0x657   : > { %v3029_v56 = vpop.eup %3028  ;;  %1259 = vadd.xlane.f32.xlu0 %v1258_v55 }
 0x658   : > { %v1261_v57 = vsel %vm975_vm5, %v3029_v56, 0.0 }
 0x659   : > { %1262 = vadd.xlane.f32.xlu1 %v1261_v57 }
 0x66a   : > { %1487 = vrot.lane.b32.xlu1 %v3375_v19, %s3163_s19 }
 0x66d   : > { %1321 = vrot.lane.b32.xlu0 %v3373_v18, %s3164_s25 }
 0x66e   : > { %1540 = vrot.lane.b32.xlu1 %v3373_v18, %s3162_s27 }
 0x671   : > { %1538 = vrot.lane.b32.xlu0 %v3373_v18, %s3163_s19  ;;  %s3745_s19 = sld [smem:[#allocation7_spill]] }
 0x677   : > { %s3746_s18 = sadd.s32 4294967295, %s3745_s19  }
 0x678   : > { %p3656_p6 = scmp.eq.s32.totalorder %s3746_s18, 1 }
 0x687   : > { %v3460_v58 = vpop.f32.mrb[12].mxu1 }
 0x688   : > { %v2796_v59 = vpop.f32.mrb[13].mxu1 }
 0x689   : > { %v3462_v60 = vpop.f32.mrb[14].mxu1 }
 0x68a   : > { %v1116_v61 = vpack.c.bf16 %v3462_v60, %v3460_v58  ;;  %v2797_v62 = vpop.f32.mrb[15].mxu1 }
 0x68f   : > { %v1162_v63 = vpop.f32.mrb[16].mxu1 }
 0x690   : > { %v1220_v0 = vmul.f32 0.35355338, %v1162_v63  ;;  %v2808_v1 = vpop.f32.mrb[17].mxu1 }
 0x691   : > { %v1165_v2 = vpop.f32.mrb[18].mxu1 }
 0x692   : > { %v1221_v3 = vmul.f32 0.35355338, %v1165_v2  ;;  %v2809_v4 = vpop.f32.mrb[19].mxu1  ;;  %v1224_v5 = vsel %vm3391_vm4, %v1220_v0, -1e+30 }
 0x693   : > { %v1228_v6 = vsel %vm975_vm5, %v1224_v5, -inf }
 0x694   : > { %1229 = vmax.xlane.f32.xlu1 %v1228_v6  ;;  %v1225_v7 = vsel %vm3398_vm6, %v1221_v3, -1e+30 }
 0x695   : > { %v1231_v9 = vsel %vm975_vm5, %v1225_v7, -inf }
 0x696   : > { %1232 = vmax.xlane.f32.xlu0 %v1231_v9 }
 0x6a5   : > { %1274 = vrot.lane.b32.xlu1 %v3375_v19, %s3164_s25  ;;  %s3169_s25 = smov [#allocation3]  }
 0x6e4   : > { %v1260_v11 = vpop.xlane.xlu0 %1259 }
 0x6e5   : > { %3030 = vrcp.f32 %v1260_v11 }
 0x6e6   : > { %v1263_v12 = vpop.xlane.xlu1 %1262 }
 0x6e7   : > { %3032 = vrcp.f32 %v1263_v12 }
 0x6e8   : > { %v1322_v13 = vpop.permute.xlu0 %1321 }
 0x6e9   : > { %2823 = vmatpush3.bf16.msra.mxu0 %v1322_v13 }
 0x6ea   : > { %2840 = vmatprep.subr.bf16.mxu0 %v3156_v8  ;;  %v1488_v21 = vpop.permute.xlu1 %1487 }
 0x6ec   : > { %v1539_v27 = vpop.permute.xlu0 %1538 }
 0x6ee   : > { %v1541_v24 = vpop.permute.xlu1 %1540 }
 0x6ef   : > { %v3031_v14 = vpop.eup %3030  ;;  %v1546_v25 = vsel %vm865_vm3, %v1541_v24, 0 }
 0x6f0   : > { %v1269_v16 = vmul.f32 %v3031_v14, %v3027_v54  ;;  %v859_v14 = vld [vmem:[%s3743_s20 + $0x4] sm:$0xf] }
 0x6f1   : > { %v3033_v15 = vpop.eup %3032 }
 0x6f2   : > { %v1271_v17 = vmul.f32 %v3033_v15, %v3029_v56  ;;  %v1378_v15 = vsel %vm1376_vm7, %v859_v14, 0 }
 0x6f4   : > { %v1273_v20 = vpack.c.bf16 %v1271_v17, %v1269_v16  ;;  %v858_v16 = vld [vmem:[%s3743_s20] sm:$0xf] }
 0x6f6   : > { %2825 = vmatmul.mubr.msk.bf16.vlgmr.msra.gmra.mrb[8].mxu0 %vm975_vm5, %v1273_v20 }
 0x6f7   : > { %2841 = vmatpush3.bf16.xpose.msra.mxu0 %v1495_v22  ;;  %2842 = vmatprep.mubr.msk.bf16.mxu0 %vm3157_vm2, %v3156_v8 }
 0x6f8   : > { %2846 = vmatprep.subr.bf16.mxu0 %v3156_v8 }
 0x6fe   : > { %2843 = vmatmul.mubr.msk.bf16.vlgmr.msra.gmra.mrb[12].mxu0 %vm865_vm3, %v1488_v21 }
 0x6ff   : > { %2847 = vmatpush3.bf16.xpose.msra.mxu0 %v1546_v25  ;;  %2848 = vmatprep.mubr.msk.bf16.mxu0 %vm3157_vm2, %v3156_v8 }
 0x700   : > { %2858 = vmatprep.subr.bf16.mxu0 %v3156_v8 }
 0x706   : > { %2849 = vmatmul.mubr.msk.bf16.vlgmr.msra.gmra.mrb[16].mxu0 %vm865_vm3, %v1539_v27 }
 0x707   : > { %2860 = vmatprep.mubr.msk.bf16.mxu0 %vm3157_vm2, %v3156_v8 }
 0x721   : > { %v1230_v29 = vpop.xlane.xlu1 %1229 }
 0x722   : > { %v1240_v30 = vsub.f32 %v1224_v5, %v1230_v29 }
 0x723   : > { %v1233_v31 = vpop.xlane.xlu0 %1232 }
 0x724   : > { %v1244_v32 = vmul.f32 1.442695, %v1240_v30  ;;  %v1241_v33 = vsub.f32 %v1225_v7, %v1233_v31 }
 0x725   : > { %v1275_v34 = vpop.permute.xlu1 %1274 }
 0x726   : > { %3034 = vpow2.f32 %v1244_v32  ;;  %v1246_v35 = vmul.f32 1.442695, %v1241_v33  ;;  %2817 = vmatpush3.bf16.msra.mxu1 %v1275_v34 }
 0x727   : > { %2940 = vmatprep.subr.msk.bf16.mxu1 %vm1376_vm7, %v859_v14 }
 0x728   : > { %3036 = vpow2.f32 %v1246_v35 }
 0x730   : > { %v3035_v37 = vpop.eup %3034 }
 0x731   : > { %v1252_v38 = vsel %vm975_vm5, %v3035_v37, 0.0 }
 0x732   : > { %v3037_v39 = vpop.eup %3036  ;;  %1253 = vadd.xlane.f32.xlu0 %v1252_v38 }
 0x733   : > { %v1255_v40 = vsel %vm975_vm5, %v3037_v39, 0.0 }
 0x736   : > { %1256 = vadd.xlane.f32.xlu0 %v1255_v40 }
 0x7bf   : > { %v1254_v42 = vpop.xlane.xlu0 %1253 }
 0x7c0   : > { %3038 = vrcp.f32 %v1254_v42 }
 0x7c3   : > { %v1257_v43 = vpop.xlane.xlu0 %1256 }
 0x7c4   : > { %3040 = vrcp.f32 %v1257_v43 }
 0x7c9   : > { %v3489_v44 = vpop.f32.mrb[8].mxu0 }
 0x7ca   : > { %v2826_v45 = vpop.f32.mrb[9].mxu0  ;;  %v3039_v47 = vpop.eup %3038 }
 0x7cb   : > { %v3491_v46 = vpop.f32.mrb[10].mxu0  ;;  %v1265_v51 = vmul.f32 %v3039_v47, %v3035_v37 }
 0x7cc   : > { %v1369_v48 = vpack.c.bf16 %v3491_v46, %v3489_v44  ;;  %v2827_v49 = vpop.f32.mrb[11].mxu0 }
 0x7ce   : > { %v3041_v50 = vpop.eup %3040 }
 0x7cf   : > { %v1267_v52 = vmul.f32 %v3041_v50, %v3037_v39 }
 0x7d1   : > { %v1531_v53 = vpop.f32.mrb[12].mxu0  ;;  %v1272_v54 = vpack.c.bf16 %v1267_v52, %v1265_v51  ;;  %v1436_v52 = vsel %vm1376_vm7, %v858_v16, 0 }
 0x7d2   : > { %v1589_v55 = vmul.f32 0.35355338, %v1531_v53  ;;  %v2844_v56 = vpop.f32.mrb[13].mxu0 }
 0x7d3   : > { %2819 = vmatmul.mubr.msk.bf16.vlgmr.msra.gmra.mrb[20].mxu1 %vm975_vm5, %v1272_v54  ;;  %v1534_v57 = vpop.f32.mrb[14].mxu0 }
 0x7d4   : > { %v1590_v59 = vmul.f32 0.35355338, %v1534_v57  ;;  %v2845_v62 = vpop.f32.mrb[15].mxu0  ;;  %v1593_v63 = vsel %vm3391_vm4, %v1589_v55, -1e+30  ;;  %2829 = vmatpush3.bf16.msra.mxu1 %v1378_v15 }
 0x7d5   : > { %v1597_v0 = vsel %vm975_vm5, %v1593_v63, -inf  ;;  %2941 = vmatprep.subr.msk.bf16.mxu1 %vm1376_vm7, %v858_v16 }
 0x7d6   : > { %1598 = vmax.xlane.f32.xlu0 %v1597_v0  ;;  %v1594_v1 = vsel %vm3398_vm6, %v1590_v59, -1e+30 }
 0x7d7   : > { %v1600_v3 = vsel %vm975_vm5, %v1594_v1, -inf }
 0x7d9   : > { %v1582_v2 = vpop.f32.mrb[16].mxu0 }
 0x7da   : > { %v1591_v4 = vmul.f32 0.35355338, %v1582_v2  ;;  %v2850_v5 = vpop.f32.mrb[17].mxu0  ;;  %1601 = vmax.xlane.f32.xlu0 %v1600_v3  ;;  %v860_v3 = vld [vmem:[%s3743_s20 + $0x8] sm:$0xf] }
 0x7db   : > { %v1585_v6 = vpop.f32.mrb[18].mxu0 }
 0x7dc   : > { %v1592_v7 = vmul.f32 0.35355338, %v1585_v6  ;;  %v2851_v9 = vpop.f32.mrb[19].mxu0  ;;  %v1595_v10 = vsel %vm3391_vm4, %v1591_v4, -1e+30  ;;  %v1746_v4 = vsel %vm1376_vm7, %v860_v3, 0 }
 0x7dd   : > { %v1603_v11 = vsel %vm975_vm5, %v1595_v10, -inf }
 0x7de   : > { %1604 = vmax.xlane.f32.xlu0 %v1603_v11  ;;  %v1596_v12 = vsel %vm3398_vm6, %v1592_v7, -1e+30 }
 0x7df   : > { %v1606_v13 = vsel %vm975_vm5, %v1596_v12, -inf }
 0x7e2   : > { %1607 = vmax.xlane.f32.xlu0 %v1606_v13 }
 0x863   : > { %v1599_v17 = vpop.xlane.xlu0 %1598 }
 0x864   : > { %v1609_v20 = vsub.f32 %v1593_v63, %v1599_v17 }
 0x866   : > { %v1613_v21 = vmul.f32 1.442695, %v1609_v20 }
 0x867   : > { %v1602_v22 = vpop.xlane.xlu0 %1601 }
 0x868   : > { %3042 = vpow2.f32 %v1613_v21  ;;  %v1610_v24 = vsub.f32 %v1594_v1, %v1602_v22 }
 0x86a   : > { %v1615_v25 = vmul.f32 1.442695, %v1610_v24 }
 0x86b   : > { %v1605_v27 = vpop.xlane.xlu0 %1604 }
 0x86c   : > { %3044 = vpow2.f32 %v1615_v25  ;;  %v1611_v29 = vsub.f32 %v1595_v10, %v1605_v27 }
 0x86e   : > { %v1617_v30 = vmul.f32 1.442695, %v1611_v29 }
 0x86f   : > { %v1608_v31 = vpop.xlane.xlu0 %1607 }
 0x870   : > { %3046 = vpow2.f32 %v1617_v30  ;;  %v1612_v32 = vsub.f32 %v1596_v12, %v1608_v31 }
 0x872   : > { %v3043_v33 = vpop.eup %3042  ;;  %v1619_v34 = vmul.f32 1.442695, %v1612_v32 }
 0x873   : > { %v1621_v35 = vsel %vm975_vm5, %v3043_v33, 0.0 }
 0x874   : > { %3048 = vpow2.f32 %v1619_v34  ;;  %1622 = vadd.xlane.f32.xlu1 %v1621_v35 }
 0x876   : > { %v3045_v37 = vpop.eup %3044 }
 0x877   : > { %v1624_v38 = vsel %vm975_vm5, %v3045_v37, 0.0 }
 0x878   : > { %1625 = vadd.xlane.f32.xlu0 %v1624_v38 }
 0x87a   : > { %v3047_v39 = vpop.eup %3046 }
 0x87b   : > { %v1627_v40 = vsel %vm975_vm5, %v3047_v39, 0.0 }
 0x87c   : > { %1628 = vadd.xlane.f32.xlu0 %v1627_v40 }
 0x87e   : > { %v3049_v42 = vpop.eup %3048 }
 0x87f   : > { %v1630_v43 = vsel %vm975_vm5, %v3049_v42, 0.0 }
 0x880   : > { %1631 = vadd.xlane.f32.xlu0 %v1630_v43 }
 0x885   : > { %1690 = vrot.lane.b32.xlu1 %v3373_v18, %s3165_s30 }
 0x896   : > { %1643 = vrot.lane.b32.xlu0 %v3375_v19, %s3165_s30 }
 0x89a   : > { %1803 = vrot.lane.b32.xlu0 %v3375_v19, %s3166_s17 }
 0x89e   : > { %1854 = vrot.lane.b32.xlu0 %v3373_v18, %s3166_s17 }
 0x8a2   : > { %1801 = vrot.lane.b32.xlu0 %v3375_v19, %s3167_s14 }
 0x8a6   : > { %1852 = vrot.lane.b32.xlu0 %v3373_v18, %s3167_s14  ;;  %v1314_v45 = vpop.f32.mrb[20].mxu1 }
 0x8a7   : > { %v2820_v47 = vpop.f32.mrb[21].mxu1 }
 0x8a8   : > { %v1317_v49 = vpop.f32.mrb[22].mxu1 }
 0x8a9   : > { %v1368_v50 = vpack.c.bf16 %v1317_v49, %v1314_v45  ;;  %v2821_v51 = vpop.f32.mrb[23].mxu1 }
 0x8ab   : > { %2830 = vmatprep.mubr.msk.bf16.mxu1 %vm865_vm3, %v1368_v50 }
 0x8ac   : > { %2831 = vmatmul.mubr.msk.bf16.vlgmr.msra.gmra.mrb[24].mxu1 %vm865_vm3, %v1369_v48 }
 0x8ad   : > { %2836 = vmatprep.mubr.msk.bf16.mxu1 %vm865_vm3, %v1116_v61  ;;  %2835 = vmatpush3.bf16.msra.mxu1 %v1436_v52 }
 0x8ae   : > { %2852 = vmatprep.subr.bf16.mxu1 %v3156_v8 }
 0x8b8   : > { %2837 = vmatmul.mubr.msk.bf16.vlgmr.msra.gmra.mrb[24].mxu1 %vm865_vm3, %v1117_v28 }
 0x8b9   : > { %2854 = vmatprep.mubr.msk.bf16.mxu1 %vm3157_vm2, %v3156_v8 }
 0x901   : > { %v1623_v53 = vpop.xlane.xlu1 %1622 }
 0x902   : > { %3050 = vrcp.f32 %v1623_v53 }
 0x905   : > { %v1691_v44 = vpop.permute.xlu1 %1690  ;;  %v1626_v46 = vpop.xlane.xlu0 %1625 }
 0x906   : > { %3052 = vrcp.f32 %v1626_v46  ;;  %2859 = vmatpush3.bf16.msra.mxu0 %v1691_v44 }
 0x907   : > { %2870 = vmatprep.subr.bf16.mxu0 %v3156_v8 }
 0x909   : > { %v1629_v58 = vpop.xlane.xlu0 %1628 }
 0x90a   : > { %3054 = vrcp.f32 %v1629_v58 }
 0x90c   : > { %v3051_v61 = vpop.eup %3050 }
 0x90d   : > { %v1632_v60 = vpop.xlane.xlu0 %1631  ;;  %v1634_v23 = vmul.f32 %v3051_v61, %v3043_v33 }
 0x90e   : > { %3056 = vrcp.f32 %v1632_v60 }
 0x910   : > { %v3053_v48 = vpop.eup %3052 }
 0x911   : > { %v1636_v26 = vmul.f32 %v3053_v48, %v3045_v37  ;;  %v1644_v28 = vpop.permute.xlu0 %1643 }
 0x912   : > { %2853 = vmatpush3.bf16.msra.mxu1 %v1644_v28 }
 0x913   : > { %v1641_v54 = vpack.c.bf16 %v1636_v26, %v1634_v23  ;;  %2942 = vmatprep.subr.msk.bf16.mxu1 %vm1376_vm7, %v860_v3 }
 0x914   : > { %v3055_v55 = vpop.eup %3054 }
 0x915   : > { %2855 = vmatmul.mubr.msk.bf16.vlgmr.msra.gmra.mrb[28].mxu1 %vm975_vm5, %v1641_v54  ;;  %v1804_v57 = vpop.permute.xlu0 %1803  ;;  %v1638_v59 = vmul.f32 %v3055_v55, %v3047_v39 }
 0x916   : > { %v1809_v0 = vsel %vm865_vm3, %v1804_v57, 0  ;;  %2865 = vmatpush3.bf16.msra.mxu1 %v1746_v4 }
 0x917   : > { %2876 = vmatprep.subr.bf16.mxu1 %v3156_v8 }
 0x918   : > { %v3057_v56 = vpop.eup %3056 }
 0x919   : > { %v1640_v62 = vmul.f32 %v3057_v56, %v3049_v42  ;;  %v1855_v1 = vpop.permute.xlu0 %1854 }
 0x91a   : > { %v1860_v16 = vsel %vm865_vm3, %v1855_v1, 0 }
 0x91b   : > { %v1642_v63 = vpack.c.bf16 %v1640_v62, %v1638_v59 }
 0x91d   : > { %2861 = vmatmul.mubr.msk.bf16.vlgmr.msra.gmra.mrb[20].mxu0 %vm975_vm5, %v1642_v63  ;;  %v1802_v2 = vpop.permute.xlu0 %1801 }
 0x91e   : > { %2871 = vmatpush3.bf16.xpose.msra.mxu0 %v1809_v0  ;;  %2872 = vmatprep.mubr.msk.bf16.mxu0 %vm3157_vm2, %v3156_v8 }
 0x91f   : > { %2882 = vmatprep.subr.bf16.mxu0 %v3156_v8 }
 0x921   : > { %v1853_v29 = vpop.permute.xlu0 %1852 }
 0x925   : > { %2873 = vmatmul.mubr.msk.bf16.vlgmr.msra.gmra.mrb[24].mxu0 %vm865_vm3, %v1802_v2 }
 0x926   : > { %2884 = vmatprep.mubr.msk.bf16.mxu0 %vm3157_vm2, %v3156_v8 }
 0x9e8   : > { %v1683_v5 = vpop.f32.mrb[28].mxu1 }
 0x9e9   : > { %v2856_v6 = vpop.f32.mrb[29].mxu1 }
 0x9ea   : > { %v1686_v7 = vpop.f32.mrb[30].mxu1 }
 0x9eb   : > { %v1737_v9 = vpack.c.bf16 %v1686_v7, %v1683_v5  ;;  %v2857_v10 = vpop.f32.mrb[31].mxu1 }
 0x9ec   : > { %v861_v10 = vld [vmem:[%s3743_s20 + $0xc] sm:$0xf]  ;;  %s2460_s20 = sshll.u32 %s3169_s25, 4  ;;  %s3660_s20 = int_to_ptr.vmem [resolvable:$true] %s2460_s20 }
 0x9ed   : > { %2866 = vmatprep.mubr.msk.bf16.mxu1 %vm865_vm3, %v1737_v9  ;;  %s3102_s30 = scalar_lea.vmem %s3660_s20, 512  ;;  %p3109_p10 = scmp.lt.s32.totalorder %s3660_s20, %s3660_s20 }
 0x9ee   : > { %p3103_p7 = scmp.ne.s32.totalorder %s3660_s20, %s3102_s30  ;;  %p3110_p11 = scmp.lt.s32.totalorder %s3102_s30, %s3102_s30 }
 0x9f0   : > { %v1730_v11 = vpop.f32.mrb[20].mxu0  ;;  %p3104_p8 = pnand %p3103_p7, %p3656_p6  ;;  %p3111_p12 = por %p3110_p11, %p3109_p10 }
 0x9f1   : > { %v2862_v12 = vpop.f32.mrb[21].mxu0 }
 0x9f2   : > { %v1733_v13 = vpop.f32.mrb[22].mxu0  ;;  %p3105_p9 = pneg %p3104_p8 }
 0x9f3   : > { %v1738_v14 = vpack.c.bf16 %v1733_v13, %v1730_v11  ;;  %v2863_v15 = vpop.f32.mrb[23].mxu0  ;;  %v2060_v11 = vsel %vm1376_vm7, %v861_v10, 0 }
 0x9f4   : > { %p3112_p13 = pnand %p3111_p12, %p3105_p9 }
 0x9f5   : > { %2867 = vmatmul.mubr.msk.bf16.vlgmr.msra.gmra.mrb[24].mxu1 %vm865_vm3, %v1738_v14 }
 0x9f6   : > { %2877 = vmatpush3.bf16.xpose.msra.mxu1 %v1860_v16  ;;  %2878 = vmatprep.mubr.msk.bf16.mxu1 %vm3157_vm2, %v3156_v8 }
 0x9f7   : > { %2888 = vmatprep.subr.bf16.mxu1 %v3156_v8 }
 0x9f8   : > { %v1845_v17 = vpop.f32.mrb[24].mxu0 }
 0x9f9   : > { %v1903_v20 = vmul.f32 0.35355338, %v1845_v17  ;;  %v2874_v21 = vpop.f32.mrb[25].mxu0 }
 0x9fa   : > { %v1848_v22 = vpop.f32.mrb[26].mxu0 }
 0x9fb   : > { %v1904_v24 = vmul.f32 0.35355338, %v1848_v22  ;;  %v2875_v25 = vpop.f32.mrb[27].mxu0  ;;  %v1907_v27 = vsel %vm3391_vm4, %v1903_v20, -1e+30 }
 0x9fc   : > { %v1911_v30 = vsel %vm975_vm5, %v1907_v27, -inf }
 0x9fd   : > { %1912 = vmax.xlane.f32.xlu0 %v1911_v30  ;;  %2879 = vmatmul.mubr.msk.bf16.vlgmr.msra.gmra.mrb[32].mxu1 %vm865_vm3, %v1853_v29  ;;  %v1908_v31 = vsel %vm3398_vm6, %v1904_v24, -1e+30  ;;  %v3098_v30 = vld [vmem:[#allocation2 + $0x10] sm:$0xff] }
 0x9fe   : > { %v1914_v32 = vsel %vm975_vm5, %v1908_v31, -inf  ;;  %2890 = vmatprep.mubr.msk.bf16.mxu1 %vm3157_vm2, %v3156_v8 }
 0x9ff   : > { %1915 = vmax.xlane.f32.xlu1 %v1914_v32  ;;  %v3099_v32 = vld [vmem:[#allocation2] sm:$0xff] }
 0xa8a   : > { %v1913_v33 = vpop.xlane.xlu0 %1912 }
 0xa8b   : > { %v1923_v34 = vsub.f32 %v1907_v27, %v1913_v33  ;;  %v2681_v27 = vld [vmem:[%s3744_s24] ss:$0 sm:$0xff] }
 0xa8c   : > { %v1916_v39 = vpop.xlane.xlu1 %1915 }
 0xa8d   : > { %v1927_v35 = vmul.f32 1.442695, %v1923_v34  ;;  %v1924_v40 = vsub.f32 %v1908_v31, %v1916_v39 }
 0xa8f   : > { %3058 = vpow2.f32 %v1927_v35  ;;  %v1929_v42 = vmul.f32 1.442695, %v1924_v40  ;;  %v3101_v40 = vld [vmem:[#allocation2 + $0x8] sm:$0xff] }
 0xa91   : > { %3060 = vpow2.f32 %v1929_v42 }
 0xa99   : > { %v3059_v37 = vpop.eup %3058 }
 0xa9a   : > { %v1935_v38 = vsel %vm975_vm5, %v3059_v37, 0.0 }
 0xa9b   : > { %1936 = vadd.xlane.f32.xlu1 %v1935_v38  ;;  %v3061_v46 = vpop.eup %3060  ;;  %v3100_v38 = vld [vmem:[#allocation2 + $0x18] sm:$0xff] }
 0xa9c   : > { %v1938_v58 = vsel %vm975_vm5, %v3061_v46, 0.0 }
 0xad0   : > { %v1896_v43 = vpop.f32.mrb[32].mxu1 }
 0xad1   : > { %v1905_v45 = vmul.f32 0.35355338, %v1896_v43  ;;  %v2880_v47 = vpop.f32.mrb[33].mxu1 }
 0xad2   : > { %v1899_v49 = vpop.f32.mrb[34].mxu1 }
 0xad3   : > { %v1906_v50 = vmul.f32 0.35355338, %v1899_v49  ;;  %v2881_v51 = vpop.f32.mrb[35].mxu1  ;;  %v1909_v8 = vsel %vm3391_vm4, %v1905_v45, -1e+30 }
 0xad4   : > { %v1917_v52 = vsel %vm975_vm5, %v1909_v8, -inf }
 0xad5   : > { %1918 = vmax.xlane.f32.xlu0 %v1917_v52  ;;  %v1910_v53 = vsel %vm3398_vm6, %v1906_v50, -1e+30 }
 0xad6   : > { %v1920_v44 = vsel %vm975_vm5, %v1910_v53, -inf }
 0xad9   : > { %1921 = vmax.xlane.f32.xlu0 %v1920_v44 }
 0xadd   : > { %1939 = vadd.xlane.f32.xlu0 %v1938_v58 }
 0xb28   : > { %v1937_v57 = vpop.xlane.xlu1 %1936 }
 0xb62   : > { %v1919_v60 = vpop.xlane.xlu0 %1918 }
 0xb63   : > { %v1925_v61 = vsub.f32 %v1909_v8, %v1919_v60 }
 0xb65   : > { %v1931_v48 = vmul.f32 1.442695, %v1925_v61 }
 0xb66   : > { %v1922_v23 = vpop.xlane.xlu0 %1921 }
 0xb67   : > { %3062 = vpow2.f32 %v1931_v48  ;;  %v1926_v36 = vsub.f32 %v1910_v53, %v1922_v23 }
 0xb69   : > { %v1933_v26 = vmul.f32 1.442695, %v1926_v36 }
 0xb6a   : > { %v1940_v56 = vpop.xlane.xlu0 %1939 }
 0xb6b   : > { %3064 = vpow2.f32 %v1933_v26 }
 0xb6c   : > { %3066 = vrcp.f32 %v1940_v56 }
 0xb6d   : > { %3068 = vrcp.f32 %v1937_v57 }
 0xb71   : > { %v3063_v28 = vpop.eup %3062 }
 0xb72   : > { %v1941_v54 = vsel %vm975_vm5, %v3063_v28, 0.0 }
 0xb73   : > { %1942 = vadd.xlane.f32.xlu1 %v1941_v54 }
 0xb75   : > { %v3065_v41 = vpop.eup %3064 }
 0xb76   : > { %v1944_v55 = vsel %vm975_vm5, %v3065_v41, 0.0  ;;  %v3067_v59 = vpop.eup %3066 }
 0xb77   : > { %1945 = vadd.xlane.f32.xlu0 %v1944_v55  ;;  %v3069_v63 = vpop.eup %3068  ;;  %v1950_v0 = vmul.f32 %v3067_v59, %v3061_v46 }
 0xb78   : > { %v1948_v1 = vmul.f32 %v3069_v63, %v3059_v37 }
 0xb7a   : > { %v1955_v4 = vpack.c.bf16 %v1950_v0, %v1948_v1  ;;  %v2992_v0 = vld [vmem:[%s3306_s4] sm:$0xff]   ;;  %v2993_v1 = vld [vmem:[%s3306_s4 + $0x8] sm:$0xff]  }
 0xb84   : > { %1957 = vrot.lane.b32.xlu1 %v3375_v19, %s3168_s15 }
 0xb8d   : > { %2004 = vrot.lane.b32.xlu0 %v3373_v18, %s3168_s15 }
 0xc00   : > { %v1943_v62 = vpop.xlane.xlu1 %1942 }
 0xc01   : > { %3070 = vrcp.f32 %v1943_v62 }
 0xc04   : > { %v1958_v2 = vpop.permute.xlu1 %1957  ;;  %v1946_v3 = vpop.xlane.xlu0 %1945 }
 0xc05   : > { %3072 = vrcp.f32 %v1946_v3  ;;  %2883 = vmatpush3.bf16.msra.mxu0 %v1958_v2 }
 0xc06   : > { %2900 = vmatprep.subr.bf16.mxu0 %v2992_v0 }
 0xc08   : > { %2885 = vmatmul.mubr.msk.bf16.vlgmr.msra.gmra.mrb[28].mxu0 %vm975_vm5, %v1955_v4  ;;  %v2005_v19 = vpop.permute.xlu0 %2004 }
 0xc09   : > { %2889 = vmatpush3.bf16.msra.mxu1 %v2005_v19  ;;  %2901 = vmatpush3.bf16.msra.mxu0 %v2992_v0 }
 0xc0a   : > { %2943 = vmatprep.subr.msk.bf16.mxu1 %vm1376_vm7, %v861_v10  ;;  %2902 = vmatprep.subr.bf16.mxu0 %v2993_v1 }
 0xc0b   : > { %v3071_v18 = vpop.eup %3070 }
 0xc0c   : > { %v1952_v6 = vmul.f32 %v3071_v18, %v3063_v28 }
 0xc0d   : > { %2903 = vmatpush3.bf16.msra.mxu0 %v2993_v1 }
 0xc0f   : > { %v3073_v5 = vpop.eup %3072 }
 0xc10   : > { %v1954_v7 = vmul.f32 %v3073_v5, %v3065_v41 }
 0xc12   : > { %v1956_v9 = vpack.c.bf16 %v1954_v7, %v1952_v6 }
 0xc14   : > { %2891 = vmatmul.mubr.msk.bf16.vlgmr.msra.gmra.mrb[36].mxu1 %vm975_vm5, %v1956_v9 }
 0xc15   : > { %2895 = vmatpush3.bf16.msra.mxu1 %v2060_v11 }
 0xcdb   : > { %v1997_v12 = vpop.f32.mrb[28].mxu0 }
 0xcdc   : > { %v2886_v13 = vpop.f32.mrb[29].mxu0 }
 0xcdd   : > { %v2000_v14 = vpop.f32.mrb[30].mxu0 }
 0xcde   : > { %v2051_v15 = vpack.c.bf16 %v2000_v14, %v1997_v12  ;;  %v2887_v16 = vpop.f32.mrb[31].mxu0  ;;  %v2682_v14 = vld [vmem:[%s648_s3] ss:$0 sm:$0xff] }
 0xce0   : > { %2896 = vmatprep.mubr.msk.bf16.mxu1 %vm865_vm3, %v2051_v15 }
 0xce7   : > { %v2044_v17 = vpop.f32.mrb[36].mxu1 }
 0xce8   : > { %v2892_v20 = vpop.f32.mrb[37].mxu1 }
 0xce9   : > { %v2047_v21 = vpop.f32.mrb[38].mxu1 }
 0xcea   : > { %v2052_v22 = vpack.c.bf16 %v2047_v21, %v2044_v17  ;;  %v2893_v24 = vpop.f32.mrb[39].mxu1 }
 0xcec   : > { %2897 = vmatmul.mubr.msk.bf16.vlgmr.msra.gmra.mrb[24].mxu1 %vm865_vm3, %v2052_v22  ;;  %v2683_v22 = vld [vmem:[%s651_s28] ss:$0 sm:$0xff] }
 0xdbf   : > { %v2898_v25 = vpop.f32.mrb[24].mxu1 }
 0xdc0   : > { %v2096_v29 = vpop.f32.mrb[25].mxu1  ;;  %v2117_v31 = vadd.f32 %v3098_v30, %v2898_v25 }
 0xdc1   : > { %v2115_v33 = vadd.f32 %v3099_v32, %v2096_v29  ;;  %v2899_v34 = vpop.f32.mrb[26].mxu1 }
 0xdc2   : > { %v2099_v35 = vpop.f32.mrb[27].mxu1  ;;  %v2118_v39 = vadd.f32 %v3100_v38, %v2899_v34  ;;  %v3595_v43 = vadd.f32 %v2681_v27, %v2117_v31 }
 0xdc3   : > { %v3593_v37 = vadd.f32 %v2681_v27, %v2115_v33  ;;  %v2116_v42 = vadd.f32 %v3101_v40, %v2099_v35  ;;  %v2994_v40 = vld [vmem:[%s3316_s22] sm:$0xff]  }
 0xdc4   : > { %v3601_v49 = vadd.f32 %v2681_v27, %v2118_v39  ;;  %v2138_v51 = vsel %vm695_vm1, %v3595_v43, 0.0  ;;  %2908 = vmatprep.subr.bf16.mxu0 %v2994_v40 }
 0xdc5   : > { %v3597_v45 = vadd.f32 %v2681_v27, %v2116_v42  ;;  %v2132_v47 = vsel %vm695_vm1, %v3593_v37, 0.0  ;;  %v2995_v42 = vld [vmem:[%s3316_s22 + $0x8] sm:$0xff]  }
 0xdc6   : > { %2133 = vadd.xlane.f32.xlu1 %v2132_v47  ;;  %v2141_v8 = vsel %vm695_vm1, %v3601_v49, 0.0  ;;  %v2996_v47 = vld [vmem:[%s3316_s22 + $0x10] sm:$0xff]  }
 0xdc7   : > { %v2135_v50 = vsel %vm695_vm1, %v3597_v45, 0.0 }
 0xdc8   : > { %2136 = vadd.xlane.f32.xlu0 %v2135_v50  ;;  %v2997_v50 = vld [vmem:[%s3316_s22 + $0x18] sm:$0xff]  }
 0xdca   : > { %2139 = vadd.xlane.f32.xlu1 %v2138_v51  ;;  %v2998_v51 = vld [vmem:[%s3316_s22 + $0x20] sm:$0xff]  }
 0xdcc   : > { %2142 = vadd.xlane.f32.xlu0 %v2141_v8  ;;  %v2999_v8 = vld [vmem:[%s3316_s22 + $0x28] sm:$0xff]  }
 0xe53   : > { %v2134_v52 = vpop.xlane.xlu1 %2133 }
 0xe54   : > { %v2144_v53 = vmul.f32 0.03125, %v2134_v52  ;;  %v3000_v52 = vld [vmem:[%s3316_s22 + $0x30] sm:$0xff]  }
 0xe55   : > { %v2137_v44 = vpop.xlane.xlu0 %2136 }
 0xe56   : > { %v2148_v46 = vsub.f32 %v3593_v37, %v2144_v53  ;;  %v2145_v58 = vmul.f32 0.03125, %v2137_v44  ;;  %v3001_v53 = vld [vmem:[%s3316_s22 + $0x38] sm:$0xff]   ;;  %v2684_v44 = vld [vmem:[%s659_s6] ss:$0 sm:$0xff] }
 0xe57   : > { %v2140_v60 = vpop.xlane.xlu1 %2139 }
 0xe58   : > { %v2149_v61 = vsub.f32 %v3597_v45, %v2145_v58  ;;  %v2146_v48 = vmul.f32 0.03125, %v2140_v60  ;;  %v2152_v23 = vmul.f32 %v2148_v46, %v2148_v46 }
 0xe59   : > { %v2143_v36 = vpop.xlane.xlu0 %2142 }
 0xe5a   : > { %v2150_v26 = vsub.f32 %v3595_v43, %v2146_v48  ;;  %v2147_v28 = vmul.f32 0.03125, %v2143_v36  ;;  %v2156_v54 = vsel %vm695_vm1, %v2152_v23, 0.0  ;;  %v2153_v41 = vmul.f32 %v2149_v61, %v2149_v61 }
 0xe5b   : > { %2157 = vadd.xlane.f32.xlu1 %v2156_v54 }
 0xe5c   : > { %v2151_v55 = vsub.f32 %v3601_v49, %v2147_v28  ;;  %v2159_v56 = vsel %vm695_vm1, %v2153_v41, 0.0  ;;  %v2154_v57 = vmul.f32 %v2150_v26, %v2150_v26 }
 0xe5d   : > { %2160 = vadd.xlane.f32.xlu0 %v2159_v56 }
 0xe5e   : > { %v2162_v59 = vsel %vm695_vm1, %v2154_v57, 0.0  ;;  %v2155_v62 = vmul.f32 %v2151_v55, %v2151_v55 }
 0xe5f   : > { %2163 = vadd.xlane.f32.xlu1 %v2162_v59 }
 0xe60   : > { %v2165_v63 = vsel %vm695_vm1, %v2155_v62, 0.0 }
 0xe61   : > { %2166 = vadd.xlane.f32.xlu0 %v2165_v63 }
 0xee8   : > { %v2158_v2 = vpop.xlane.xlu1 %2157 }
 0xee9   : > { %v2168_v3 = vmul.f32 0.03125, %v2158_v2 }
 0xeea   : > { %v2161_v4 = vpop.xlane.xlu0 %2160 }
 0xeeb   : > { %v2172_v19 = vadd.f32 1e-05, %v2168_v3  ;;  %v2169_v18 = vmul.f32 0.03125, %v2161_v4 }
 0xeec   : > { %v2164_v5 = vpop.xlane.xlu1 %2163 }
 0xeed   : > { %3074 = vrsqrt.f32 %v2172_v19  ;;  %v2173_v6 = vadd.f32 1e-05, %v2169_v18  ;;  %v2170_v7 = vmul.f32 0.03125, %v2164_v5 }
 0xeee   : > { %v2167_v9 = vpop.xlane.xlu0 %2166 }
 0xeef   : > { %3076 = vrsqrt.f32 %v2173_v6  ;;  %v2174_v10 = vadd.f32 1e-05, %v2170_v7  ;;  %v2171_v11 = vmul.f32 0.03125, %v2167_v9 }
 0xef1   : > { %3078 = vrsqrt.f32 %v2174_v10  ;;  %v2175_v12 = vadd.f32 1e-05, %v2171_v11 }
 0xef3   : > { %3080 = vrsqrt.f32 %v2175_v12 }
 0xef7   : > { %v3075_v13 = vpop.eup %3074 }
 0xef8   : > { %v2180_v15 = vmul.f32 %v3075_v13, %v2148_v46 }
 0xef9   : > { %v3077_v16 = vpop.eup %3076 }
 0xefa   : > { %v2181_v17 = vmul.f32 %v3077_v16, %v2149_v61  ;;  %v2190_v20 = vmul.f32 %v2682_v14, %v2180_v15  ;;  %v2693_v16 = vld [vmem:[%s667_s26] ss:$0 sm:$0xff] }
 0xefb   : > { %v3079_v21 = vpop.eup %3078 }
 0xefc   : > { %v2182_v24 = vmul.f32 %v3079_v21, %v2150_v26  ;;  %v2191_v25 = vmul.f32 %v2682_v14, %v2181_v17  ;;  %v2200_v31 = vadd.f32 %v2683_v22, %v2190_v20 }
 0xefd   : > { %v3081_v27 = vpop.eup %3080 }
 0xefe   : > { %v2192_v29 = vmul.f32 %v2682_v14, %v2182_v24  ;;  %v2183_v30 = vmul.f32 %v3081_v27, %v2151_v55  ;;  %v2201_v32 = vadd.f32 %v2683_v22, %v2191_v25 }
 0xf00   : > { %v2193_v33 = vmul.f32 %v2682_v14, %v2183_v30  ;;  %v2204_v34 = vpack.c.bf16 %v2201_v32, %v2200_v31  ;;  %v2202_v35 = vadd.f32 %v2683_v22, %v2192_v29 }
 0xf02   : > { %2904 = vmatprep.mubr.msk.bf16.mxu0 %vm695_vm1, %v2204_v34  ;;  %v2203_v38 = vadd.f32 %v2683_v22, %v2193_v33 }
 0xf04   : > { %v2205_v39 = vpack.c.bf16 %v2203_v38, %v2202_v35 }
 0xf06   : > { %2905 = vmatmul.mubr.msk.bf16.vlgmr.msra.gmra.mrb[32].mxu0 %vm695_vm1, %v2205_v39 }
 0xf07   : > { %2909 = vmatpush3.bf16.msra.mxu0 %v2994_v40 }
 0xf08   : > { %2910 = vmatprep.subr.bf16.mxu0 %v2995_v42 }
 0xf0b   : > { %2911 = vmatpush3.bf16.msra.mxu0 %v2995_v42 }
 0xf0c   : > { %2912 = vmatprep.subr.bf16.mxu0 %v2996_v47 }
 0xf0f   : > { %2913 = vmatpush3.bf16.msra.mxu0 %v2996_v47 }
 0xf10   : > { %2914 = vmatprep.subr.bf16.mxu0 %v2997_v50 }
 0xf13   : > { %2915 = vmatpush3.bf16.msra.mxu0 %v2997_v50 }
 0xf14   : > { %2916 = vmatprep.subr.bf16.mxu0 %v2998_v51 }
 0xf17   : > { %2917 = vmatpush3.bf16.msra.mxu0 %v2998_v51 }
 0xf18   : > { %2918 = vmatprep.subr.bf16.mxu0 %v2999_v8 }
 0xf1b   : > { %2919 = vmatpush3.bf16.msra.mxu0 %v2999_v8 }
 0xf1c   : > { %2920 = vmatprep.subr.bf16.mxu0 %v3000_v52 }
 0xf1f   : > { %2921 = vmatpush3.bf16.msra.mxu0 %v3000_v52 }
 0xf20   : > { %2922 = vmatprep.subr.bf16.mxu0 %v3001_v53 }
 0xf23   : > { %2923 = vmatpush3.bf16.msra.mxu0 %v3001_v53 }
 0xfd9   : > { %v2906_v46 = vpop.f32.mrb[32].mxu0 }
 0xfda   : > { %v2278_v58 = vadd.f32 %v2906_v46, %v2684_v44  ;;  %v2269_v60 = vpop.f32.mrb[33].mxu0 }
 0xfdb   : > { %v2270_v61 = vadd.f32 %v2684_v44, %v2269_v60  ;;  %v2907_v48 = vpop.f32.mrb[34].mxu0 }
 0xfdc   : > { %v2691_v23 = vmul.f32 -1.702, %v2278_v58  ;;  %v2281_v36 = vadd.f32 %v2907_v48, %v2684_v44  ;;  %v2272_v26 = vpop.f32.mrb[35].mxu0 }
 0xfdd   : > { %v2689_v28 = vmul.f32 -1.702, %v2270_v61  ;;  %v2273_v54 = vadd.f32 %v2684_v44, %v2272_v26 }
 0xfde   : > { %v2296_v41 = vmul.f32 1.442695, %v2691_v23  ;;  %v2692_v55 = vmul.f32 -1.702, %v2281_v36 }
 0xfdf   : > { %v2292_v56 = vmul.f32 1.442695, %v2689_v28  ;;  %v2690_v57 = vmul.f32 -1.702, %v2273_v54 }
 0xfe0   : > { %3082 = vpow2.f32 %v2296_v41  ;;  %v2298_v59 = vmul.f32 1.442695, %v2692_v55 }
 0xfe1   : > { %3084 = vpow2.f32 %v2292_v56  ;;  %v2294_v62 = vmul.f32 1.442695, %v2690_v57 }
 0xfe2   : > { %3086 = vpow2.f32 %v2298_v59 }
 0xfe3   : > { %3088 = vpow2.f32 %v2294_v62 }
 0xfea   : > { %v3083_v63 = vpop.eup %3082 }
 0xfeb   : > { %v3085_v0 = vpop.eup %3084  ;;  %v2302_v1 = vadd.f32 1.0, %v3083_v63 }
 0xfec   : > { %v3087_v2 = vpop.eup %3086  ;;  %v2300_v3 = vadd.f32 1.0, %v3085_v0 }
 0xfed   : > { %v3089_v4 = vpop.eup %3088  ;;  %3090 = vrcp.f32 %v2302_v1  ;;  %v2303_v19 = vadd.f32 1.0, %v3087_v2 }
 0xfee   : > { %3092 = vrcp.f32 %v2300_v3  ;;  %v2301_v18 = vadd.f32 1.0, %v3089_v4 }
 0xfef   : > { %3094 = vrcp.f32 %v2303_v19 }
 0xff0   : > { %3096 = vrcp.f32 %v2301_v18 }
 0xff7   : > { %v3091_v5 = vpop.eup %3090 }
 0xff8   : > { %v3093_v6 = vpop.eup %3092  ;;  %v2314_v10 = vmul.f32 %v3091_v5, %v2278_v58 }
 0xff9   : > { %v3095_v7 = vpop.eup %3094  ;;  %v2312_v12 = vmul.f32 %v3093_v6, %v2270_v61 }
 0xffa   : > { %v3097_v9 = vpop.eup %3096  ;;  %v2315_v11 = vmul.f32 %v3095_v7, %v2281_v36 }
 0xffb   : > { %v2313_v13 = vmul.f32 %v3097_v9, %v2273_v54 }
 0xffc   : > { %v2317_v14 = vpack.c.bf16 %v2315_v11, %v2314_v10 }
 0xffd   : > { %v2316_v15 = vpack.c.bf16 %v2313_v13, %v2312_v12 }
 0xfff   : > { %2924 = vmatprep.mubr.bf16.mxu0 %v2316_v15 }
0x1000   : > { %2925 = vmatmul.mubr.bf16.vlgmr.msra.gmra.mrb[36].mxu0 %v2317_v14 }
0x10d3   : > { %v2926_v17 = vpop.f32.mrb[36].mxu0 }
0x10d4   : > { %v2432_v20 = vadd.f32 %v2926_v17, %v2693_v16  ;;  %v2423_v21 = vpop.f32.mrb[37].mxu0 }
0x10d5   : > { %v2424_v22 = vadd.f32 %v2693_v16, %v2423_v21  ;;  %v2927_v24 = vpop.f32.mrb[38].mxu0 }
0x10d6   : > { %v2440_v25 = vadd.f32 %v2432_v20, %v3595_v43  ;;  %v2435_v27 = vadd.f32 %v2927_v24, %v2693_v16  ;;  %v2426_v29 = vpop.f32.mrb[39].mxu0 }
0x10d7   : > { %v2438_v30 = vadd.f32 %v2424_v22, %v3593_v37  ;;  %v2427_v31 = vadd.f32 %v2693_v16, %v2426_v29 }
0x10d8   : > { %2444 = vst.msk [vmem:[#allocation2 + $0x10] sm:$0xff] %vm695_vm1, %v2440_v25  ;;  %2448 = vst.msk [vmem:[#allocation3 + $0x10] sm:$0xff] %vm695_vm1, %v2440_v25  ;;  %v2441_v32 = vadd.f32 %v2435_v27, %v3601_v49 }
0x10d9   : > { %2442 = vst.msk [vmem:[#allocation2] sm:$0xff] %vm695_vm1, %v2438_v30  ;;  %2446 = vst.msk [vmem:[#allocation3] sm:$0xff] %vm695_vm1, %v2438_v30  ;;  %v2439_v37 = vadd.f32 %v2427_v31, %v3597_v45 }
0x10da   : > { %2445 = vst.msk [vmem:[#allocation2 + $0x18] sm:$0xff] %vm695_vm1, %v2441_v32  ;;  %2449 = vst.msk [vmem:[#allocation3 + $0x18] sm:$0xff] %vm695_vm1, %v2441_v32 }
0x10db   : > { %2443 = vst.msk [vmem:[#allocation2 + $0x8] sm:$0xff] %vm695_vm1, %v2439_v37  ;;  %2447 = vst.msk [vmem:[#allocation3 + $0x8] sm:$0xff] %vm695_vm1, %v2439_v37 }
0x10dc   : > { %3115 = shalt.err (!%p3112_p13)
}
0x10dd   : > { %s3748_s15 = sld [smem:[#allocation13_spill]] }
0x10e3   : > { %s3749_s21 = smov %s3748_s15  ;;  %s3116_s29 = scalar_lea.hbm %s3748_s15, 512 }
0x10e4   : > { %p3117_p0 = scmp.ne.s32.totalorder %s3749_s21, %s3116_s29  ;;  %p3122_p3 = scmp.lt.u32.totalorder %s3116_s29, %s3749_s21 }
0x10e6   : > { %p3118_p1 = pnand %p3117_p0, %p3656_p6 }
0x10e8   : > { %p3119_p2 = pneg %p3118_p1 }
0x10ea   : > { %p3124_p4 = pnand %p3122_p3, %p3119_p2 }
0x10ec   : > { %3127 = shalt.err (!%p3124_p4)
}
0x10ed   : > { %s3170_s27 = smov 128   ;;  %s3171_s3 = smov 8  }
0x10ee   : > { %2945 = dma.vmem_to_hbm [thread:$0]  (%p3656_p6), %s3660_s20, 512, %s3749_s21, [#allocation4], %s3170_s27, %s3170_s27, %s3171_s3  }
0x10ef   : > { %3141 = dma.done.wait (%p3656_p6), [#allocation4], 512  }
0x10f0   : > { %3143 = vsyncadd (%p3656_p6), [#allocation4], 4294966784 }
0x10f1 PF: > { %s3750_s22 = sld [smem:[#allocation7_spill]]  ;;  %s3751_s29 = sld [smem:[#allocation6_spill]] }
0x10f2   : > { %s3752_s30 = sld [smem:[#allocation8_spill]] }
0x10f7   : > { %s25_s15 = sadd.s32 1, %s3750_s22  }
0x10f8   : > { %p22_p5 = scmp.ge.s32.totalorder %s25_s15, 4  }
0x10fa   :  { %24 = sbr.rel (!%p22_p5) target bundleno = 7 (0x7), region = 144 }
0x1101   :  { %2476 = vsyncpa [#allocation4], 1 }
0x1102   :  { %2478 = vsyncpa [#allocation4 + $0x1], 1 }

</bundles_post_ra>
